<compile_context>
chip_gen: v7x
topology: tpu7x:2x2x1
jax: 0.10.0
libtpu: 0.0.40
codegen_flags: <defaults>
</compile_context>

<pallas_src>
import functools

import jax
import jax.numpy as jnp
from jax import lax
from jax.experimental import pallas as pl
from jax.experimental.pallas import tpu as pltpu

LUMINANCE_WEIGHT = (0.29891, 0.58661, 0.11448)  # nunif channel_weighted_loss (BT.601)
CHARBONNIER_EPS = 1.0e-3                        # nunif CharbonnierLoss default eps
LBP_WEIGHT = 0.4                                # YL1LBP(weight=0.4)
KSIZE = 5                                       # YL1LBP(kernel_size=5)
OUT_CHANNELS = 64                               # LBPLoss default out_channels
ROW_BLOCK = 8                                   # output rows per in-kernel MXU block


# TODO(synk): torch.manual_seed(71)-based Bernoulli RNG cannot be reproduced bit-exactly
# in JAX; the LBCNN filters are regenerated deterministically with jax.random instead.
def make_lbcnn_filters(out_channels, ksize, sparsity=0.9, seed=71):
    key = jax.random.PRNGKey(seed)
    k_sign, k_mask = jax.random.split(key)
    shape = (out_channels, 1, ksize, ksize)
    signs = jnp.where(jax.random.bernoulli(k_sign, 0.5, shape), 1.0, -1.0).astype(jnp.float32)
    keep = jax.random.uniform(k_mask, shape) <= sparsity
    filters = jnp.where(keep, signs, jnp.float32(0.0))
    # LBPLoss.__init__ overrides for filter 0 (scaled center tap).
    filters = filters.at[0].set(0.0)
    filters = filters.at[0, :, ksize // 2, ksize // 2].set(0.5 * ksize ** 2)
    return filters


def _yl1lbp_kernel(x_ref, t_ref, w_ref, out_ref, diff_ref, *,
                   batch, ksize, out_channels, row_block):
    c = pl.program_id(1)
    H = x_ref.shape[2]
    W = x_ref.shape[3]
    K = ksize
    KK = K * K
    HO = H - K + 1
    WO = W - K + 1

    # ClampLoss: clamp both operands to [0, 1]. Conv is linear, so the conv of the
    # clamped difference is computed once and reused by the L1 and LBP terms.
    d = jnp.clip(x_ref[0, 0], 0.0, 1.0) - jnp.clip(t_ref[0, 0], 0.0, 1.0)   # (H, W)
    diff_ref[...] = d

    # ---- L1 term (reuses the clamped difference) ----
    l1_sum = jnp.sum(jnp.abs(d))

    # Weight matrix (OC, K*K), loaded once per grid step and reused by every block.
    wt = w_ref[...]

    def block_charb(row0, nrows):
        # Strip of the diff plane covering `nrows` output rows plus the K-1 halo.
        db = diff_ref[pl.ds(row0, nrows + K - 1), :]                        # (nrows+K-1, W)
        # Manual im2col (supported slices + concats only):
        #   patches[t, y*WO + x] = diff[row0 + y + ky, x + kx],  t = ky*K + kx
        rows = []
        for t in range(KK):
            ky, kx = t // K, t % K
            rows.append(jnp.concatenate(
                [db[y + ky:y + ky + 1, kx:kx + WO] for y in range(nrows)], axis=1))
        patches = jnp.concatenate(rows, axis=0)                             # (K*K, nrows*WO)
        # MXU matmul: OC on sublanes, flattened spatial on lanes (lane-dense).
        conv = jnp.dot(wt, patches, preferred_element_type=jnp.float32)     # (OC, nrows*WO)
        return jnp.sum(jnp.sqrt(conv * conv + jnp.float32(CHARBONNIER_EPS ** 2)))

    nblocks = HO // row_block
    rem = HO - nblocks * row_block
    charb_sum = jnp.float32(0.0)
    if nblocks > 0:
        def body(i, acc):
            row0 = pl.multiple_of(i * row_block, row_block)
            return acc + block_charb(row0, row_block)
        charb_sum = lax.fori_loop(0, nblocks, body, charb_sum)
    if rem > 0:
        charb_sum = charb_sum + block_charb(nblocks * row_block, rem)

    # Luminance weight + mean normalizations folded into the per-(b, c) partial:
    #   partial(b, c) = lum_w[c] * ( l1_sum / (B*H*W) + 0.4 * charb_sum / (B*OC*HO*WO) )
    lum = jnp.where(c == 0, LUMINANCE_WEIGHT[0],
                    jnp.where(c == 1, LUMINANCE_WEIGHT[1], LUMINANCE_WEIGHT[2]))
    l1_denom = float(batch * H * W)
    charb_denom = float(batch * out_channels * HO * WO)
    contrib = lum * (l1_sum / l1_denom + (LBP_WEIGHT / charb_denom) * charb_sum)
    # Full lane-shaped tile per (b, c) so every grid cell writes its own block
    # (race-free => both grid axes can be "parallel" / megacore-sharded).
    out_ref[...] = jnp.full((1, 1, 1, 128), contrib, dtype=jnp.float32)


def yl1lbp_loss(x, t, w_oc_kk):
    B, C, H, W = x.shape
    OC, KK = w_oc_kk.shape
    K = int(round(KK ** 0.5))
    kernel = functools.partial(_yl1lbp_kernel, batch=B, ksize=K,
                               out_channels=OC, row_block=ROW_BLOCK)
    partials = pl.pallas_call(
        kernel,
        out_shape=jax.ShapeDtypeStruct((B, C, 1, 128), jnp.float32),
        grid=(B, C),
        in_specs=[
            pl.BlockSpec((1, 1, H, W), lambda b, c: (b, c, 0, 0)),
            pl.BlockSpec((1, 1, H, W), lambda b, c: (b, c, 0, 0)),
            pl.BlockSpec((OC, KK), lambda b, c: (0, 0)),
        ],
        out_specs=pl.BlockSpec((1, 1, 1, 128), lambda b, c: (b, c, 0, 0)),
        scratch_shapes=[pltpu.VMEM((H, W), jnp.float32)],
        compiler_params=pltpu.CompilerParams(
            dimension_semantics=("parallel", "parallel"),
            # explicit scoped-VMEM budget; safely below v7x's 64 MiB physical VMEM
            vmem_limit_bytes=48 * 1024 * 1024),
    )(x, t, w_oc_kk)
    # Per-(b, c) partials -> scalar loss.
    return jnp.sum(partials[:, :, 0, 0])


def reference_yl1lbp(x, t, filters):
    """Plain-JAX reference (same math, torch ordering of reductions)."""
    xc = jnp.clip(x, 0.0, 1.0)
    tc = jnp.clip(t, 0.0, 1.0)

    def conv(img):
        return jax.lax.conv_general_dilated(
            img, filters, window_strides=(1, 1), padding="VALID",
            dimension_numbers=("NCHW", "OIHW", "NCHW"),
            precision=jax.lax.Precision.HIGHEST)

    total_l1 = 0.0
    total_lbp = 0.0
    for c, w in enumerate(LUMINANCE_WEIGHT):
        xi, ti = xc[:, c:c + 1], tc[:, c:c + 1]
        total_l1 = total_l1 + w * jnp.mean(jnp.abs(xi - ti))
        ci, ct = conv(xi), conv(ti)
        total_lbp = total_lbp + w * jnp.mean(
            jnp.sqrt((ci - ct) ** 2 + CHARBONNIER_EPS ** 2))
    return total_l1 + LBP_WEIGHT * total_lbp


if __name__ == "__main__":
    B, C, H, W = 2, 3, 24, 24
    key = jax.random.PRNGKey(0)
    kx_, kt_ = jax.random.split(key)
    # Values slightly outside [0, 1] to exercise the ClampLoss path.
    x = jax.random.uniform(kx_, (B, C, H, W), jnp.float32, minval=-0.1, maxval=1.1)
    t = jax.random.uniform(kt_, (B, C, H, W), jnp.float32, minval=-0.1, maxval=1.1)

    filters = make_lbcnn_filters(OUT_CHANNELS, KSIZE)              # (OC, 1, K, K)
    w_oc_kk = filters.reshape(OUT_CHANNELS, KSIZE * KSIZE)         # (OC, K*K), tap = ky*K+kx

    loss = yl1lbp_loss(x, t, w_oc_kk)
    loss = jax.block_until_ready(loss)

    ref = reference_yl1lbp(x, t, filters)
    assert abs(float(loss) - float(ref)) <= 1e-4 * max(1.0, abs(float(ref))), (float(loss), float(ref))

    print("KERNEL_OK")
</pallas_src>

<mosaic_0001>
module attributes {stable_mosaic.version = 11 : i64} {
  func.func @_yl1lbp_kernel(%arg0: i32, %arg1: i32, %arg2: memref<1x1x24x24xf32, #tpu.memory_space<vmem>>, %arg3: memref<1x1x24x24xf32, #tpu.memory_space<vmem>>, %arg4: memref<64x25xf32, #tpu.memory_space<vmem>>, %arg5: memref<1x1x1x128xf32, #tpu.memory_space<vmem>>, %arg6: memref<24x24xf32, #tpu.memory_space<vmem>>) attributes {dimension_semantics = [#tpu.dimension_semantics<parallel>, #tpu.dimension_semantics<parallel>], iteration_bounds = array<i64: 2, 3>, scalar_prefetch = 0 : i64, scratch_operands = 1 : i64, tpu.core_type = #tpu.core_type<tc>, window_params = [{transform_indices = @transform_0, window_bounds = array<i64: 1, 1, 24, 24>}, {transform_indices = @transform_1, window_bounds = array<i64: 1, 1, 24, 24>}, {pipeline_mode = #tpu.pipeline_mode<synchronous>, transform_indices = @transform_2, window_bounds = array<i64: 64, 25>}, {transform_indices = @transform_3, window_bounds = array<i64: 1, 1, 1, 128>}]} {
    %c0 = arith.constant 0 : index
    %c0_0 = arith.constant 0 : index
    %c0_1 = arith.constant 0 : index
    %c0_2 = arith.constant 0 : index
    %0 = vector.load %arg2[%c0, %c0_0, %c0_1, %c0_2] : memref<1x1x24x24xf32, #tpu.memory_space<vmem>>, vector<1x1x24x24xf32>
    %1 = vector.shape_cast %0 : vector<1x1x24x24xf32> to vector<24x24xf32>
    %cst = arith.constant 0.000000e+00 : f32
    %cst_3 = arith.constant 1.000000e+00 : f32
    %2 = vector.broadcast %cst : f32 to vector<24x24xf32>
    %3 = arith.maximumf %2, %1 : vector<24x24xf32>
    %4 = vector.broadcast %cst_3 : f32 to vector<24x24xf32>
    %5 = arith.minimumf %4, %3 : vector<24x24xf32>
    %c0_4 = arith.constant 0 : index
    %c0_5 = arith.constant 0 : index
    %c0_6 = arith.constant 0 : index
    %c0_7 = arith.constant 0 : index
    %6 = vector.load %arg3[%c0_4, %c0_5, %c0_6, %c0_7] : memref<1x1x24x24xf32, #tpu.memory_space<vmem>>, vector<1x1x24x24xf32>
    %7 = vector.shape_cast %6 : vector<1x1x24x24xf32> to vector<24x24xf32>
    %cst_8 = arith.constant 0.000000e+00 : f32
    %cst_9 = arith.constant 1.000000e+00 : f32
    %8 = vector.broadcast %cst_8 : f32 to vector<24x24xf32>
    %9 = arith.maximumf %8, %7 : vector<24x24xf32>
    %10 = vector.broadcast %cst_9 : f32 to vector<24x24xf32>
    %11 = arith.minimumf %10, %9 : vector<24x24xf32>
    %12 = arith.subf %5, %11 : vector<24x24xf32>
    %c0_10 = arith.constant 0 : index
    %c0_11 = arith.constant 0 : index
    %13 = vector.load %arg6[%c0_10, %c0_11] : memref<24x24xf32, #tpu.memory_space<vmem>>, vector<24x24xf32>
    tpu.vector_store %arg6[%c0_10, %c0_11], %12 {strides = array<i32>} : memref<24x24xf32, #tpu.memory_space<vmem>>, vector<24x24xf32>,
    %14 = math.absf %12 : vector<24x24xf32>
    %15 = vector.shape_cast %14 : vector<24x24xf32> to vector<1x24x24xf32>
    %cst_12 = arith.constant dense<0.000000e+00> : vector<1xf32>
    %16 = vector.multi_reduction <add>, %15, %cst_12 [1, 2] : vector<1x24x24xf32> to vector<1xf32>
    %17 = vector.shape_cast %16 : vector<1xf32> to vector<1x1x1xf32>
    %18 = vector.extract %17[0, 0, 0] : f32 from vector<1x1x1xf32>
    %c0_13 = arith.constant 0 : index
    %c0_14 = arith.constant 0 : index
    %19 = vector.load %arg4[%c0_13, %c0_14] : memref<64x25xf32, #tpu.memory_space<vmem>>, vector<64x25xf32>
    %cst_15 = arith.constant 0.000000e+00 : f32
    %c0_i32 = arith.constant 0 : i32
    %c2_i32 = arith.constant 2 : i32
    %20 = arith.addi %c0_i32, %c2_i32 : i32
    %c1_i32 = arith.constant 1 : i32
    %21 = scf.for %arg7 = %c0_i32 to %20 step %c1_i32 iter_args(%arg8 = %cst_15) -> (f32)  : i32 {
      %c8_i32 = arith.constant 8 : i32
      %171 = arith.muli %arg7, %c8_i32 : i32
      %172 = tpu.assume_multiple %171, 8 : i32
      %173 = arith.index_cast %172 : i32 to index
      %c0_32 = arith.constant 0 : index
      %174 = vector.load %arg6[%173, %c0_32] : memref<24x24xf32, #tpu.memory_space<vmem>>, vector<12x24xf32>
      %175 = vector.extract_strided_slice %174 {offsets = [0, 0], sizes = [1, 20], strides = [1, 1]} : vector<12x24xf32> to vector<1x20xf32>
      %176 = vector.extract_strided_slice %174 {offsets = [1, 0], sizes = [1, 20], strides = [1, 1]} : vector<12x24xf32> to vector<1x20xf32>
      %177 = vector.extract_strided_slice %174 {offsets = [2, 0], sizes = [1, 20], strides = [1, 1]} : vector<12x24xf32> to vector<1x20xf32>
      %178 = vector.extract_strided_slice %174 {offsets = [3, 0], sizes = [1, 20], strides = [1, 1]} : vector<12x24xf32> to vector<1x20xf32>
      %179 = vector.extract_strided_slice %174 {offsets = [4, 0], sizes = [1, 20], strides = [1, 1]} : vector<12x24xf32> to vector<1x20xf32>
      %180 = vector.extract_strided_slice %174 {offsets = [5, 0], sizes = [1, 20], strides = [1, 1]} : vector<12x24xf32> to vector<1x20xf32>
      %181 = vector.extract_strided_slice %174 {offsets = [6, 0], sizes = [1, 20], strides = [1, 1]} : vector<12x24xf32> to vector<1x20xf32>
      %182 = vector.extract_strided_slice %174 {offsets = [7, 0], sizes = [1, 20], strides = [1, 1]} : vector<12x24xf32> to vector<1x20xf32>
      %183 = tpu.concatenate %175, %176, %177, %178, %179, %180, %181, %182 in 1 : vector<1x20xf32>, vector<1x20xf32>, vector<1x20xf32>, vector<1x20xf32>, vector<1x20xf32>, vector<1x20xf32>, vector<1x20xf32>, vector<1x20xf32> -> vector<1x160xf32>
      %184 = vector.extract_strided_slice %174 {offsets = [0, 1], sizes = [1, 20], strides = [1, 1]} : vector<12x24xf32> to vector<1x20xf32>
      %185 = vector.extract_strided_slice %174 {offsets = [1, 1], sizes = [1, 20], strides = [1, 1]} : vector<12x24xf32> to vector<1x20xf32>
      %186 = vector.extract_strided_slice %174 {offsets = [2, 1], sizes = [1, 20], strides = [1, 1]} : vector<12x24xf32> to vector<1x20xf32>
      %187 = vector.extract_strided_slice %174 {offsets = [3, 1], sizes = [1, 20], strides = [1, 1]} : vector<12x24xf32> to vector<1x20xf32>
      %188 = vector.extract_strided_slice %174 {offsets = [4, 1], sizes = [1, 20], strides = [1, 1]} : vector<12x24xf32> to vector<1x20xf32>
      %189 = vector.extract_strided_slice %174 {offsets = [5, 1], sizes = [1, 20], strides = [1, 1]} : vector<12x24xf32> to vector<1x20xf32>
      %190 = vector.extract_strided_slice %174 {offsets = [6, 1], sizes = [1, 20], strides = [1, 1]} : vector<12x24xf32> to vector<1x20xf32>
      %191 = vector.extract_strided_slice %174 {offsets = [7, 1], sizes = [1, 20], strides = [1, 1]} : vector<12x24xf32> to vector<1x20xf32>
      %192 = tpu.concatenate %184, %185, %186, %187, %188, %189, %190, %191 in 1 : vector<1x20xf32>, vector<1x20xf32>, vector<1x20xf32>, vector<1x20xf32>, vector<1x20xf32>, vector<1x20xf32>, vector<1x20xf32>, vector<1x20xf32> -> vector<1x160xf32>
      %193 = vector.extract_strided_slice %174 {offsets = [0, 2], sizes = [1, 20], strides = [1, 1]} : vector<12x24xf32> to vector<1x20xf32>
      %194 = vector.extract_strided_slice %174 {offsets = [1, 2], sizes = [1, 20], strides = [1, 1]} : vector<12x24xf32> to vector<1x20xf32>
      %195 = vector.extract_strided_slice %174 {offsets = [2, 2], sizes = [1, 20], strides = [1, 1]} : vector<12x24xf32> to vector<1x20xf32>
      %196 = vector.extract_strided_slice %174 {offsets = [3, 2], sizes = [1, 20], strides = [1, 1]} : vector<12x24xf32> to vector<1x20xf32>
      %197 = vector.extract_strided_slice %174 {offsets = [4, 2], sizes = [1, 20], strides = [1, 1]} : vector<12x24xf32> to vector<1x20xf32>
      %198 = vector.extract_strided_slice %174 {offsets = [5, 2], sizes = [1, 20], strides = [1, 1]} : vector<12x24xf32> to vector<1x20xf32>
      %199 = vector.extract_strided_slice %174 {offsets = [6, 2], sizes = [1, 20], strides = [1, 1]} : vector<12x24xf32> to vector<1x20xf32>
      %200 = vector.extract_strided_slice %174 {offsets = [7, 2], sizes = [1, 20], strides = [1, 1]} : vector<12x24xf32> to vector<1x20xf32>
      %201 = tpu.concatenate %193, %194, %195, %196, %197, %198, %199, %200 in 1 : vector<1x20xf32>, vector<1x20xf32>, vector<1x20xf32>, vector<1x20xf32>, vector<1x20xf32>, vector<1x20xf32>, vector<1x20xf32>, vector<1x20xf32> -> vector<1x160xf32>
      %202 = vector.extract_strided_slice %174 {offsets = [0, 3], sizes = [1, 20], strides = [1, 1]} : vector<12x24xf32> to vector<1x20xf32>
      %203 = vector.extract_strided_slice %174 {offsets = [1, 3], sizes = [1, 20], strides = [1, 1]} : vector<12x24xf32> to vector<1x20xf32>
      %204 = vector.extract_strided_slice %174 {offsets = [2, 3], sizes = [1, 20], strides = [1, 1]} : vector<12x24xf32> to vector<1x20xf32>
      %205 = vector.extract_strided_slice %174 {offsets = [3, 3], sizes = [1, 20], strides = [1, 1]} : vector<12x24xf32> to vector<1x20xf32>
      %206 = vector.extract_strided_slice %174 {offsets = [4, 3], sizes = [1, 20], strides = [1, 1]} : vector<12x24xf32> to vector<1x20xf32>
      %207 = vector.extract_strided_slice %174 {offsets = [5, 3], sizes = [1, 20], strides = [1, 1]} : vector<12x24xf32> to vector<1x20xf32>
      %208 = vector.extract_strided_slice %174 {offsets = [6, 3], sizes = [1, 20], strides = [1, 1]} : vector<12x24xf32> to vector<1x20xf32>
      %209 = vector.extract_strided_slice %174 {offsets = [7, 3], sizes = [1, 20], strides = [1, 1]} : vector<12x24xf32> to vector<1x20xf32>
      %210 = tpu.concatenate %202, %203, %204, %205, %206, %207, %208, %209 in 1 : vector<1x20xf32>, vector<1x20xf32>, vector<1x20xf32>, vector<1x20xf32>, vector<1x20xf32>, vector<1x20xf32>, vector<1x20xf32>, vector<1x20xf32> -> vector<1x160xf32>
      %211 = vector.extract_strided_slice %174 {offsets = [0, 4], sizes = [1, 20], strides = [1, 1]} : vector<12x24xf32> to vector<1x20xf32>
      %212 = vector.extract_strided_slice %174 {offsets = [1, 4], sizes = [1, 20], strides = [1, 1]} : vector<12x24xf32> to vector<1x20xf32>
      %213 = vector.extract_strided_slice %174 {offsets = [2, 4], sizes = [1, 20], strides = [1, 1]} : vector<12x24xf32> to vector<1x20xf32>
      %214 = vector.extract_strided_slice %174 {offsets = [3, 4], sizes = [1, 20], strides = [1, 1]} : vector<12x24xf32> to vector<1x20xf32>
      %215 = vector.extract_strided_slice %174 {offsets = [4, 4], sizes = [1, 20], strides = [1, 1]} : vector<12x24xf32> to vector<1x20xf32>
      %216 = vector.extract_strided_slice %174 {offsets = [5, 4], sizes = [1, 20], strides = [1, 1]} : vector<12x24xf32> to vector<1x20xf32>
      %217 = vector.extract_strided_slice %174 {offsets = [6, 4], sizes = [1, 20], strides = [1, 1]} : vector<12x24xf32> to vector<1x20xf32>
      %218 = vector.extract_strided_slice %174 {offsets = [7, 4], sizes = [1, 20], strides = [1, 1]} : vector<12x24xf32> to vector<1x20xf32>
      %219 = tpu.concatenate %211, %212, %213, %214, %215, %216, %217, %218 in 1 : vector<1x20xf32>, vector<1x20xf32>, vector<1x20xf32>, vector<1x20xf32>, vector<1x20xf32>, vector<1x20xf32>, vector<1x20xf32>, vector<1x20xf32> -> vector<1x160xf32>
      %220 = vector.extract_strided_slice %174 {offsets = [1, 0], sizes = [1, 20], strides = [1, 1]} : vector<12x24xf32> to vector<1x20xf32>
      %221 = vector.extract_strided_slice %174 {offsets = [2, 0], sizes = [1, 20], strides = [1, 1]} : vector<12x24xf32> to vector<1x20xf32>
      %222 = vector.extract_strided_slice %174 {offsets = [3, 0], sizes = [1, 20], strides = [1, 1]} : vector<12x24xf32> to vector<1x20xf32>
      %223 = vector.extract_strided_slice %174 {offsets = [4, 0], sizes = [1, 20], strides = [1, 1]} : vector<12x24xf32> to vector<1x20xf32>
      %224 = vector.extract_strided_slice %174 {offsets = [5, 0], sizes = [1, 20], strides = [1, 1]} : vector<12x24xf32> to vector<1x20xf32>
      %225 = vector.extract_strided_slice %174 {offsets = [6, 0], sizes = [1, 20], strides = [1, 1]} : vector<12x24xf32> to vector<1x20xf32>
      %226 = vector.extract_strided_slice %174 {offsets = [7, 0], sizes = [1, 20], strides = [1, 1]} : vector<12x24xf32> to vector<1x20xf32>
      %227 = vector.extract_strided_slice %174 {offsets = [8, 0], sizes = [1, 20], strides = [1, 1]} : vector<12x24xf32> to vector<1x20xf32>
      %228 = tpu.concatenate %220, %221, %222, %223, %224, %225, %226, %227 in 1 : vector<1x20xf32>, vector<1x20xf32>, vector<1x20xf32>, vector<1x20xf32>, vector<1x20xf32>, vector<1x20xf32>, vector<1x20xf32>, vector<1x20xf32> -> vector<1x160xf32>
      %229 = vector.extract_strided_slice %174 {offsets = [1, 1], sizes = [1, 20], strides = [1, 1]} : vector<12x24xf32> to vector<1x20xf32>
      %230 = vector.extract_strided_slice %174 {offsets = [2, 1], sizes = [1, 20], strides = [1, 1]} : vector<12x24xf32> to vector<1x20xf32>
      %231 = vector.extract_strided_slice %174 {offsets = [3, 1], sizes = [1, 20], strides = [1, 1]} : vector<12x24xf32> to vector<1x20xf32>
      %232 = vector.extract_strided_slice %174 {offsets = [4, 1], sizes = [1, 20], strides = [1, 1]} : vector<12x24xf32> to vector<1x20xf32>
      %233 = vector.extract_strided_slice %174 {offsets = [5, 1], sizes = [1, 20], strides = [1, 1]} : vector<12x24xf32> to vector<1x20xf32>
      %234 = vector.extract_strided_slice %174 {offsets = [6, 1], sizes = [1, 20], strides = [1, 1]} : vector<12x24xf32> to vector<1x20xf32>
      %235 = vector.extract_strided_slice %174 {offsets = [7, 1], sizes = [1, 20], strides = [1, 1]} : vector<12x24xf32> to vector<1x20xf32>
      %236 = vector.extract_strided_slice %174 {offsets = [8, 1], sizes = [1, 20], strides = [1, 1]} : vector<12x24xf32> to vector<1x20xf32>
      %237 = tpu.concatenate %229, %230, %231, %232, %233, %234, %235, %236 in 1 : vector<1x20xf32>, vector<1x20xf32>, vector<1x20xf32>, vector<1x20xf32>, vector<1x20xf32>, vector<1x20xf32>, vector<1x20xf32>, vector<1x20xf32> -> vector<1x160xf32>
      %238 = vector.extract_strided_slice %174 {offsets = [1, 2], sizes = [1, 20], strides = [1, 1]} : vector<12x24xf32> to vector<1x20xf32>
      %239 = vector.extract_strided_slice %174 {offsets = [2, 2], sizes = [1, 20], strides = [1, 1]} : vector<12x24xf32> to vector<1x20xf32>
      %240 = vector.extract_strided_slice %174 {offsets = [3, 2], sizes = [1, 20], strides = [1, 1]} : vector<12x24xf32> to vector<1x20xf32>
      %241 = vector.extract_strided_slice %174 {offsets = [4, 2], sizes = [1, 20], strides = [1, 1]} : vector<12x24xf32> to vector<1x20xf32>
      %242 = vector.extract_strided_slice %174 {offsets = [5, 2], sizes = [1, 20], strides = [1, 1]} : vector<12x24xf32> to vector<1x20xf32>
      %243 = vector.extract_strided_slice %174 {offsets = [6, 2], sizes = [1, 20], strides = [1, 1]} : vector<12x24xf32> to vector<1x20xf32>
      %244 = vector.extract_strided_slice %174 {offsets = [7, 2], sizes = [1, 20], strides = [1, 1]} : vector<12x24xf32> to vector<1x20xf32>
      %245 = vector.extract_strided_slice %174 {offsets = [8, 2], sizes = [1, 20], strides = [1, 1]} : vector<12x24xf32> to vector<1x20xf32>
      %246 = tpu.concatenate %238, %239, %240, %241, %242, %243, %244, %245 in 1 : vector<1x20xf32>, vector<1x20xf32>, vector<1x20xf32>, vector<1x20xf32>, vector<1x20xf32>, vector<1x20xf32>, vector<1x20xf32>, vector<1x20xf32> -> vector<1x160xf32>
      %247 = vector.extract_strided_slice %174 {offsets = [1, 3], sizes = [1, 20], strides = [1, 1]} : vector<12x24xf32> to vector<1x20xf32>
      %248 = vector.extract_strided_slice %174 {offsets = [2, 3], sizes = [1, 20], strides = [1, 1]} : vector<12x24xf32> to vector<1x20xf32>
      %249 = vector.extract_strided_slice %174 {offsets = [3, 3], sizes = [1, 20], strides = [1, 1]} : vector<12x24xf32> to vector<1x20xf32>
      %250 = vector.extract_strided_slice %174 {offsets = [4, 3], sizes = [1, 20], strides = [1, 1]} : vector<12x24xf32> to vector<1x20xf32>
      %251 = vector.extract_strided_slice %174 {offsets = [5, 3], sizes = [1, 20], strides = [1, 1]} : vector<12x24xf32> to vector<1x20xf32>
      %252 = vector.extract_strided_slice %174 {offsets = [6, 3], sizes = [1, 20], strides = [1, 1]} : vector<12x24xf32> to vector<1x20xf32>
      %253 = vector.extract_strided_slice %174 {offsets = [7, 3], sizes = [1, 20], strides = [1, 1]} : vector<12x24xf32> to vector<1x20xf32>
      %254 = vector.extract_strided_slice %174 {offsets = [8, 3], sizes = [1, 20], strides = [1, 1]} : vector<12x24xf32> to vector<1x20xf32>
      %255 = tpu.concatenate %247, %248, %249, %250, %251, %252, %253, %254 in 1 : vector<1x20xf32>, vector<1x20xf32>, vector<1x20xf32>, vector<1x20xf32>, vector<1x20xf32>, vector<1x20xf32>, vector<1x20xf32>, vector<1x20xf32> -> vector<1x160xf32>
      %256 = vector.extract_strided_slice %174 {offsets = [1, 4], sizes = [1, 20], strides = [1, 1]} : vector<12x24xf32> to vector<1x20xf32>
      %257 = vector.extract_strided_slice %174 {offsets = [2, 4], sizes = [1, 20], strides = [1, 1]} : vector<12x24xf32> to vector<1x20xf32>
      %258 = vector.extract_strided_slice %174 {offsets = [3, 4], sizes = [1, 20], strides = [1, 1]} : vector<12x24xf32> to vector<1x20xf32>
      %259 = vector.extract_strided_slice %174 {offsets = [4, 4], sizes = [1, 20], strides = [1, 1]} : vector<12x24xf32> to vector<1x20xf32>
      %260 = vector.extract_strided_slice %174 {offsets = [5, 4], sizes = [1, 20], strides = [1, 1]} : vector<12x24xf32> to vector<1x20xf32>
      %261 = vector.extract_strided_slice %174 {offsets = [6, 4], sizes = [1, 20], strides = [1, 1]} : vector<12x24xf32> to vector<1x20xf32>
      %262 = vector.extract_strided_slice %174 {offsets = [7, 4], sizes = [1, 20], strides = [1, 1]} : vector<12x24xf32> to vector<1x20xf32>
      %263 = vector.extract_strided_slice %174 {offsets = [8, 4], sizes = [1, 20], strides = [1, 1]} : vector<12x24xf32> to vector<1x20xf32>
      %264 = tpu.concatenate %256, %257, %258, %259, %260, %261, %262, %263 in 1 : vector<1x20xf32>, vector<1x20xf32>, vector<1x20xf32>, vector<1x20xf32>, vector<1x20xf32>, vector<1x20xf32>, vector<1x20xf32>, vector<1x20xf32> -> vector<1x160xf32>
      %265 = vector.extract_strided_slice %174 {offsets = [2, 0], sizes = [1, 20], strides = [1, 1]} : vector<12x24xf32> to vector<1x20xf32>
      %266 = vector.extract_strided_slice %174 {offsets = [3, 0], sizes = [1, 20], strides = [1, 1]} : vector<12x24xf32> to vector<1x20xf32>
      %267 = vector.extract_strided_slice %174 {offsets = [4, 0], sizes = [1, 20], strides = [1, 1]} : vector<12x24xf32> to vector<1x20xf32>
      %268 = vector.extract_strided_slice %174 {offsets = [5, 0], sizes = [1, 20], strides = [1, 1]} : vector<12x24xf32> to vector<1x20xf32>
      %269 = vector.extract_strided_slice %174 {offsets = [6, 0], sizes = [1, 20], strides = [1, 1]} : vector<12x24xf32> to vector<1x20xf32>
      %270 = vector.extract_strided_slice %174 {offsets = [7, 0], sizes = [1, 20], strides = [1, 1]} : vector<12x24xf32> to vector<1x20xf32>
      %271 = vector.extract_strided_slice %174 {offsets = [8, 0], sizes = [1, 20], strides = [1, 1]} : vector<12x24xf32> to vector<1x20xf32>
      %272 = vector.extract_strided_slice %174 {offsets = [9, 0], sizes = [1, 20], strides = [1, 1]} : vector<12x24xf32> to vector<1x20xf32>
      %273 = tpu.concatenate %265, %266, %267, %268, %269, %270, %271, %272 in 1 : vector<1x20xf32>, vector<1x20xf32>, vector<1x20xf32>, vector<1x20xf32>, vector<1x20xf32>, vector<1x20xf32>, vector<1x20xf32>, vector<1x20xf32> -> vector<1x160xf32>
      %274 = vector.extract_strided_slice %174 {offsets = [2, 1], sizes = [1, 20], strides = [1, 1]} : vector<12x24xf32> to vector<1x20xf32>
      %275 = vector.extract_strided_slice %174 {offsets = [3, 1], sizes = [1, 20], strides = [1, 1]} : vector<12x24xf32> to vector<1x20xf32>
      %276 = vector.extract_strided_slice %174 {offsets = [4, 1], sizes = [1, 20], strides = [1, 1]} : vector<12x24xf32> to vector<1x20xf32>
      %277 = vector.extract_strided_slice %174 {offsets = [5, 1], sizes = [1, 20], strides = [1, 1]} : vector<12x24xf32> to vector<1x20xf32>
      %278 = vector.extract_strided_slice %174 {offsets = [6, 1], sizes = [1, 20], strides = [1, 1]} : vector<12x24xf32> to vector<1x20xf32>
      %279 = vector.extract_strided_slice %174 {offsets = [7, 1], sizes = [1, 20], strides = [1, 1]} : vector<12x24xf32> to vector<1x20xf32>
      %280 = vector.extract_strided_slice %174 {offsets = [8, 1], sizes = [1, 20], strides = [1, 1]} : vector<12x24xf32> to vector<1x20xf32>
      %281 = vector.extract_strided_slice %174 {offsets = [9, 1], sizes = [1, 20], strides = [1, 1]} : vector<12x24xf32> to vector<1x20xf32>
      %282 = tpu.concatenate %274, %275, %276, %277, %278, %279, %280, %281 in 1 : vector<1x20xf32>, vector<1x20xf32>, vector<1x20xf32>, vector<1x20xf32>, vector<1x20xf32>, vector<1x20xf32>, vector<1x20xf32>, vector<1x20xf32> -> vector<1x160xf32>
      %283 = vector.extract_strided_slice %174 {offsets = [2, 2], sizes = [1, 20], strides = [1, 1]} : vector<12x24xf32> to vector<1x20xf32>
      %284 = vector.extract_strided_slice %174 {offsets = [3, 2], sizes = [1, 20], strides = [1, 1]} : vector<12x24xf32> to vector<1x20xf32>
      %285 = vector.extract_strided_slice %174 {offsets = [4, 2], sizes = [1, 20], strides = [1, 1]} : vector<12x24xf32> to vector<1x20xf32>
      %286 = vector.extract_strided_slice %174 {offsets = [5, 2], sizes = [1, 20], strides = [1, 1]} : vector<12x24xf32> to vector<1x20xf32>
      %287 = vector.extract_strided_slice %174 {offsets = [6, 2], sizes = [1, 20], strides = [1, 1]} : vector<12x24xf32> to vector<1x20xf32>
      %288 = vector.extract_strided_slice %174 {offsets = [7, 2], sizes = [1, 20], strides = [1, 1]} : vector<12x24xf32> to vector<1x20xf32>
      %289 = vector.extract_strided_slice %174 {offsets = [8, 2], sizes = [1, 20], strides = [1, 1]} : vector<12x24xf32> to vector<1x20xf32>
      %290 = vector.extract_strided_slice %174 {offsets = [9, 2], sizes = [1, 20], strides = [1, 1]} : vector<12x24xf32> to vector<1x20xf32>
      %291 = tpu.concatenate %283, %284, %285, %286, %287, %288, %289, %290 in 1 : vector<1x20xf32>, vector<1x20xf32>, vector<1x20xf32>, vector<1x20xf32>, vector<1x20xf32>, vector<1x20xf32>, vector<1x20xf32>, vector<1x20xf32> -> vector<1x160xf32>
      %292 = vector.extract_strided_slice %174 {offsets = [2, 3], sizes = [1, 20], strides = [1, 1]} : vector<12x24xf32> to vector<1x20xf32>
      %293 = vector.extract_strided_slice %174 {offsets = [3, 3], sizes = [1, 20], strides = [1, 1]} : vector<12x24xf32> to vector<1x20xf32>
      %294 = vector.extract_strided_slice %174 {offsets = [4, 3], sizes = [1, 20], strides = [1, 1]} : vector<12x24xf32> to vector<1x20xf32>
      %295 = vector.extract_strided_slice %174 {offsets = [5, 3], sizes = [1, 20], strides = [1, 1]} : vector<12x24xf32> to vector<1x20xf32>
      %296 = vector.extract_strided_slice %174 {offsets = [6, 3], sizes = [1, 20], strides = [1, 1]} : vector<12x24xf32> to vector<1x20xf32>
      %297 = vector.extract_strided_slice %174 {offsets = [7, 3], sizes = [1, 20], strides = [1, 1]} : vector<12x24xf32> to vector<1x20xf32>
      %298 = vector.extract_strided_slice %174 {offsets = [8, 3], sizes = [1, 20], strides = [1, 1]} : vector<12x24xf32> to vector<1x20xf32>
      %299 = vector.extract_strided_slice %174 {offsets = [9, 3], sizes = [1, 20], strides = [1, 1]} : vector<12x24xf32> to vector<1x20xf32>
      %300 = tpu.concatenate %292, %293, %294, %295, %296, %297, %298, %299 in 1 : vector<1x20xf32>, vector<1x20xf32>, vector<1x20xf32>, vector<1x20xf32>, vector<1x20xf32>, vector<1x20xf32>, vector<1x20xf32>, vector<1x20xf32> -> vector<1x160xf32>
      %301 = vector.extract_strided_slice %174 {offsets = [2, 4], sizes = [1, 20], strides = [1, 1]} : vector<12x24xf32> to vector<1x20xf32>
      %302 = vector.extract_strided_slice %174 {offsets = [3, 4], sizes = [1, 20], strides = [1, 1]} : vector<12x24xf32> to vector<1x20xf32>
      %303 = vector.extract_strided_slice %174 {offsets = [4, 4], sizes = [1, 20], strides = [1, 1]} : vector<12x24xf32> to vector<1x20xf32>
      %304 = vector.extract_strided_slice %174 {offsets = [5, 4], sizes = [1, 20], strides = [1, 1]} : vector<12x24xf32> to vector<1x20xf32>
      %305 = vector.extract_strided_slice %174 {offsets = [6, 4], sizes = [1, 20], strides = [1, 1]} : vector<12x24xf32> to vector<1x20xf32>
      %306 = vector.extract_strided_slice %174 {offsets = [7, 4], sizes = [1, 20], strides = [1, 1]} : vector<12x24xf32> to vector<1x20xf32>
      %307 = vector.extract_strided_slice %174 {offsets = [8, 4], sizes = [1, 20], strides = [1, 1]} : vector<12x24xf32> to vector<1x20xf32>
      %308 = vector.extract_strided_slice %174 {offsets = [9, 4], sizes = [1, 20], strides = [1, 1]} : vector<12x24xf32> to vector<1x20xf32>
      %309 = tpu.concatenate %301, %302, %303, %304, %305, %306, %307, %308 in 1 : vector<1x20xf32>, vector<1x20xf32>, vector<1x20xf32>, vector<1x20xf32>, vector<1x20xf32>, vector<1x20xf32>, vector<1x20xf32>, vector<1x20xf32> -> vector<1x160xf32>
      %310 = vector.extract_strided_slice %174 {offsets = [3, 0], sizes = [1, 20], strides = [1, 1]} : vector<12x24xf32> to vector<1x20xf32>
      %311 = vector.extract_strided_slice %174 {offsets = [4, 0], sizes = [1, 20], strides = [1, 1]} : vector<12x24xf32> to vector<1x20xf32>
      %312 = vector.extract_strided_slice %174 {offsets = [5, 0], sizes = [1, 20], strides = [1, 1]} : vector<12x24xf32> to vector<1x20xf32>
      %313 = vector.extract_strided_slice %174 {offsets = [6, 0], sizes = [1, 20], strides = [1, 1]} : vector<12x24xf32> to vector<1x20xf32>
      %314 = vector.extract_strided_slice %174 {offsets = [7, 0], sizes = [1, 20], strides = [1, 1]} : vector<12x24xf32> to vector<1x20xf32>
      %315 = vector.extract_strided_slice %174 {offsets = [8, 0], sizes = [1, 20], strides = [1, 1]} : vector<12x24xf32> to vector<1x20xf32>
      %316 = vector.extract_strided_slice %174 {offsets = [9, 0], sizes = [1, 20], strides = [1, 1]} : vector<12x24xf32> to vector<1x20xf32>
      %317 = vector.extract_strided_slice %174 {offsets = [10, 0], sizes = [1, 20], strides = [1, 1]} : vector<12x24xf32> to vector<1x20xf32>
      %318 = tpu.concatenate %310, %311, %312, %313, %314, %315, %316, %317 in 1 : vector<1x20xf32>, vector<1x20xf32>, vector<1x20xf32>, vector<1x20xf32>, vector<1x20xf32>, vector<1x20xf32>, vector<1x20xf32>, vector<1x20xf32> -> vector<1x160xf32>
      %319 = vector.extract_strided_slice %174 {offsets = [3, 1], sizes = [1, 20], strides = [1, 1]} : vector<12x24xf32> to vector<1x20xf32>
      %320 = vector.extract_strided_slice %174 {offsets = [4, 1], sizes = [1, 20], strides = [1, 1]} : vector<12x24xf32> to vector<1x20xf32>
      %321 = vector.extract_strided_slice %174 {offsets = [5, 1], sizes = [1, 20], strides = [1, 1]} : vector<12x24xf32> to vector<1x20xf32>
      %322 = vector.extract_strided_slice %174 {offsets = [6, 1], sizes = [1, 20], strides = [1, 1]} : vector<12x24xf32> to vector<1x20xf32>
      %323 = vector.extract_strided_slice %174 {offsets = [7, 1], sizes = [1, 20], strides = [1, 1]} : vector<12x24xf32> to vector<1x20xf32>
      %324 = vector.extract_strided_slice %174 {offsets = [8, 1], sizes = [1, 20], strides = [1, 1]} : vector<12x24xf32> to vector<1x20xf32>
      %325 = vector.extract_strided_slice %174 {offsets = [9, 1], sizes = [1, 20], strides = [1, 1]} : vector<12x24xf32> to vector<1x20xf32>
      %326 = vector.extract_strided_slice %174 {offsets = [10, 1], sizes = [1, 20], strides = [1, 1]} : vector<12x24xf32> to vector<1x20xf32>
      %327 = tpu.concatenate %319, %320, %321, %322, %323, %324, %325, %326 in 1 : vector<1x20xf32>, vector<1x20xf32>, vector<1x20xf32>, vector<1x20xf32>, vector<1x20xf32>, vector<1x20xf32>, vector<1x20xf32>, vector<1x20xf32> -> vector<1x160xf32>
      %328 = vector.extract_strided_slice %174 {offsets = [3, 2], sizes = [1, 20], strides = [1, 1]} : vector<12x24xf32> to vector<1x20xf32>
      %329 = vector.extract_strided_slice %174 {offsets = [4, 2], sizes = [1, 20], strides = [1, 1]} : vector<12x24xf32> to vector<1x20xf32>
      %330 = vector.extract_strided_slice %174 {offsets = [5, 2], sizes = [1, 20], strides = [1, 1]} : vector<12x24xf32> to vector<1x20xf32>
      %331 = vector.extract_strided_slice %174 {offsets = [6, 2], sizes = [1, 20], strides = [1, 1]} : vector<12x24xf32> to vector<1x20xf32>
      %332 = vector.extract_strided_slice %174 {offsets = [7, 2], sizes = [1, 20], strides = [1, 1]} : vector<12x24xf32> to vector<1x20xf32>
      %333 = vector.extract_strided_slice %174 {offsets = [8, 2], sizes = [1, 20], strides = [1, 1]} : vector<12x24xf32> to vector<1x20xf32>
      %334 = vector.extract_strided_slice %174 {offsets = [9, 2], sizes = [1, 20], strides = [1, 1]} : vector<12x24xf32> to vector<1x20xf32>
      %335 = vector.extract_strided_slice %174 {offsets = [10, 2], sizes = [1, 20], strides = [1, 1]} : vector<12x24xf32> to vector<1x20xf32>
      %336 = tpu.concatenate %328, %329, %330, %331, %332, %333, %334, %335 in 1 : vector<1x20xf32>, vector<1x20xf32>, vector<1x20xf32>, vector<1x20xf32>, vector<1x20xf32>, vector<1x20xf32>, vector<1x20xf32>, vector<1x20xf32> -> vector<1x160xf32>
      %337 = vector.extract_strided_slice %174 {offsets = [3, 3], sizes = [1, 20], strides = [1, 1]} : vector<12x24xf32> to vector<1x20xf32>
      %338 = vector.extract_strided_slice %174 {offsets = [4, 3], sizes = [1, 20], strides = [1, 1]} : vector<12x24xf32> to vector<1x20xf32>
      %339 = vector.extract_strided_slice %174 {offsets = [5, 3], sizes = [1, 20], strides = [1, 1]} : vector<12x24xf32> to vector<1x20xf32>
      %340 = vector.extract_strided_slice %174 {offsets = [6, 3], sizes = [1, 20], strides = [1, 1]} : vector<12x24xf32> to vector<1x20xf32>
      %341 = vector.extract_strided_slice %174 {offsets = [7, 3], sizes = [1, 20], strides = [1, 1]} : vector<12x24xf32> to vector<1x20xf32>
      %342 = vector.extract_strided_slice %174 {offsets = [8, 3], sizes = [1, 20], strides = [1, 1]} : vector<12x24xf32> to vector<1x20xf32>
      %343 = vector.extract_strided_slice %174 {offsets = [9, 3], sizes = [1, 20], strides = [1, 1]} : vector<12x24xf32> to vector<1x20xf32>
      %344 = vector.extract_strided_slice %174 {offsets = [10, 3], sizes = [1, 20], strides = [1, 1]} : vector<12x24xf32> to vector<1x20xf32>
      %345 = tpu.concatenate %337, %338, %339, %340, %341, %342, %343, %344 in 1 : vector<1x20xf32>, vector<1x20xf32>, vector<1x20xf32>, vector<1x20xf32>, vector<1x20xf32>, vector<1x20xf32>, vector<1x20xf32>, vector<1x20xf32> -> vector<1x160xf32>
      %346 = vector.extract_strided_slice %174 {offsets = [3, 4], sizes = [1, 20], strides = [1, 1]} : vector<12x24xf32> to vector<1x20xf32>
      %347 = vector.extract_strided_slice %174 {offsets = [4, 4], sizes = [1, 20], strides = [1, 1]} : vector<12x24xf32> to vector<1x20xf32>
      %348 = vector.extract_strided_slice %174 {offsets = [5, 4], sizes = [1, 20], strides = [1, 1]} : vector<12x24xf32> to vector<1x20xf32>
      %349 = vector.extract_strided_slice %174 {offsets = [6, 4], sizes = [1, 20], strides = [1, 1]} : vector<12x24xf32> to vector<1x20xf32>
      %350 = vector.extract_strided_slice %174 {offsets = [7, 4], sizes = [1, 20], strides = [1, 1]} : vector<12x24xf32> to vector<1x20xf32>
      %351 = vector.extract_strided_slice %174 {offsets = [8, 4], sizes = [1, 20], strides = [1, 1]} : vector<12x24xf32> to vector<1x20xf32>
      %352 = vector.extract_strided_slice %174 {offsets = [9, 4], sizes = [1, 20], strides = [1, 1]} : vector<12x24xf32> to vector<1x20xf32>
      %353 = vector.extract_strided_slice %174 {offsets = [10, 4], sizes = [1, 20], strides = [1, 1]} : vector<12x24xf32> to vector<1x20xf32>
      %354 = tpu.concatenate %346, %347, %348, %349, %350, %351, %352, %353 in 1 : vector<1x20xf32>, vector<1x20xf32>, vector<1x20xf32>, vector<1x20xf32>, vector<1x20xf32>, vector<1x20xf32>, vector<1x20xf32>, vector<1x20xf32> -> vector<1x160xf32>
      %355 = vector.extract_strided_slice %174 {offsets = [4, 0], sizes = [1, 20], strides = [1, 1]} : vector<12x24xf32> to vector<1x20xf32>
      %356 = vector.extract_strided_slice %174 {offsets = [5, 0], sizes = [1, 20], strides = [1, 1]} : vector<12x24xf32> to vector<1x20xf32>
      %357 = vector.extract_strided_slice %174 {offsets = [6, 0], sizes = [1, 20], strides = [1, 1]} : vector<12x24xf32> to vector<1x20xf32>
      %358 = vector.extract_strided_slice %174 {offsets = [7, 0], sizes = [1, 20], strides = [1, 1]} : vector<12x24xf32> to vector<1x20xf32>
      %359 = vector.extract_strided_slice %174 {offsets = [8, 0], sizes = [1, 20], strides = [1, 1]} : vector<12x24xf32> to vector<1x20xf32>
      %360 = vector.extract_strided_slice %174 {offsets = [9, 0], sizes = [1, 20], strides = [1, 1]} : vector<12x24xf32> to vector<1x20xf32>
      %361 = vector.extract_strided_slice %174 {offsets = [10, 0], sizes = [1, 20], strides = [1, 1]} : vector<12x24xf32> to vector<1x20xf32>
      %362 = vector.extract_strided_slice %174 {offsets = [11, 0], sizes = [1, 20], strides = [1, 1]} : vector<12x24xf32> to vector<1x20xf32>
      %363 = tpu.concatenate %355, %356, %357, %358, %359, %360, %361, %362 in 1 : vector<1x20xf32>, vector<1x20xf32>, vector<1x20xf32>, vector<1x20xf32>, vector<1x20xf32>, vector<1x20xf32>, vector<1x20xf32>, vector<1x20xf32> -> vector<1x160xf32>
      %364 = vector.extract_strided_slice %174 {offsets = [4, 1], sizes = [1, 20], strides = [1, 1]} : vector<12x24xf32> to vector<1x20xf32>
      %365 = vector.extract_strided_slice %174 {offsets = [5, 1], sizes = [1, 20], strides = [1, 1]} : vector<12x24xf32> to vector<1x20xf32>
      %366 = vector.extract_strided_slice %174 {offsets = [6, 1], sizes = [1, 20], strides = [1, 1]} : vector<12x24xf32> to vector<1x20xf32>
      %367 = vector.extract_strided_slice %174 {offsets = [7, 1], sizes = [1, 20], strides = [1, 1]} : vector<12x24xf32> to vector<1x20xf32>
      %368 = vector.extract_strided_slice %174 {offsets = [8, 1], sizes = [1, 20], strides = [1, 1]} : vector<12x24xf32> to vector<1x20xf32>
      %369 = vector.extract_strided_slice %174 {offsets = [9, 1], sizes = [1, 20], strides = [1, 1]} : vector<12x24xf32> to vector<1x20xf32>
      %370 = vector.extract_strided_slice %174 {offsets = [10, 1], sizes = [1, 20], strides = [1, 1]} : vector<12x24xf32> to vector<1x20xf32>
      %371 = vector.extract_strided_slice %174 {offsets = [11, 1], sizes = [1, 20], strides = [1, 1]} : vector<12x24xf32> to vector<1x20xf32>
      %372 = tpu.concatenate %364, %365, %366, %367, %368, %369, %370, %371 in 1 : vector<1x20xf32>, vector<1x20xf32>, vector<1x20xf32>, vector<1x20xf32>, vector<1x20xf32>, vector<1x20xf32>, vector<1x20xf32>, vector<1x20xf32> -> vector<1x160xf32>
      %373 = vector.extract_strided_slice %174 {offsets = [4, 2], sizes = [1, 20], strides = [1, 1]} : vector<12x24xf32> to vector<1x20xf32>
      %374 = vector.extract_strided_slice %174 {offsets = [5, 2], sizes = [1, 20], strides = [1, 1]} : vector<12x24xf32> to vector<1x20xf32>
      %375 = vector.extract_strided_slice %174 {offsets = [6, 2], sizes = [1, 20], strides = [1, 1]} : vector<12x24xf32> to vector<1x20xf32>
      %376 = vector.extract_strided_slice %174 {offsets = [7, 2], sizes = [1, 20], strides = [1, 1]} : vector<12x24xf32> to vector<1x20xf32>
      %377 = vector.extract_strided_slice %174 {offsets = [8, 2], sizes = [1, 20], strides = [1, 1]} : vector<12x24xf32> to vector<1x20xf32>
      %378 = vector.extract_strided_slice %174 {offsets = [9, 2], sizes = [1, 20], strides = [1, 1]} : vector<12x24xf32> to vector<1x20xf32>
      %379 = vector.extract_strided_slice %174 {offsets = [10, 2], sizes = [1, 20], strides = [1, 1]} : vector<12x24xf32> to vector<1x20xf32>
      %380 = vector.extract_strided_slice %174 {offsets = [11, 2], sizes = [1, 20], strides = [1, 1]} : vector<12x24xf32> to vector<1x20xf32>
      %381 = tpu.concatenate %373, %374, %375, %376, %377, %378, %379, %380 in 1 : vector<1x20xf32>, vector<1x20xf32>, vector<1x20xf32>, vector<1x20xf32>, vector<1x20xf32>, vector<1x20xf32>, vector<1x20xf32>, vector<1x20xf32> -> vector<1x160xf32>
      %382 = vector.extract_strided_slice %174 {offsets = [4, 3], sizes = [1, 20], strides = [1, 1]} : vector<12x24xf32> to vector<1x20xf32>
      %383 = vector.extract_strided_slice %174 {offsets = [5, 3], sizes = [1, 20], strides = [1, 1]} : vector<12x24xf32> to vector<1x20xf32>
      %384 = vector.extract_strided_slice %174 {offsets = [6, 3], sizes = [1, 20], strides = [1, 1]} : vector<12x24xf32> to vector<1x20xf32>
      %385 = vector.extract_strided_slice %174 {offsets = [7, 3], sizes = [1, 20], strides = [1, 1]} : vector<12x24xf32> to vector<1x20xf32>
      %386 = vector.extract_strided_slice %174 {offsets = [8, 3], sizes = [1, 20], strides = [1, 1]} : vector<12x24xf32> to vector<1x20xf32>
      %387 = vector.extract_strided_slice %174 {offsets = [9, 3], sizes = [1, 20], strides = [1, 1]} : vector<12x24xf32> to vector<1x20xf32>
      %388 = vector.extract_strided_slice %174 {offsets = [10, 3], sizes = [1, 20], strides = [1, 1]} : vector<12x24xf32> to vector<1x20xf32>
      %389 = vector.extract_strided_slice %174 {offsets = [11, 3], sizes = [1, 20], strides = [1, 1]} : vector<12x24xf32> to vector<1x20xf32>
      %390 = tpu.concatenate %382, %383, %384, %385, %386, %387, %388, %389 in 1 : vector<1x20xf32>, vector<1x20xf32>, vector<1x20xf32>, vector<1x20xf32>, vector<1x20xf32>, vector<1x20xf32>, vector<1x20xf32>, vector<1x20xf32> -> vector<1x160xf32>
      %391 = vector.extract_strided_slice %174 {offsets = [4, 4], sizes = [1, 20], strides = [1, 1]} : vector<12x24xf32> to vector<1x20xf32>
      %392 = vector.extract_strided_slice %174 {offsets = [5, 4], sizes = [1, 20], strides = [1, 1]} : vector<12x24xf32> to vector<1x20xf32>
      %393 = vector.extract_strided_slice %174 {offsets = [6, 4], sizes = [1, 20], strides = [1, 1]} : vector<12x24xf32> to vector<1x20xf32>
      %394 = vector.extract_strided_slice %174 {offsets = [7, 4], sizes = [1, 20], strides = [1, 1]} : vector<12x24xf32> to vector<1x20xf32>
      %395 = vector.extract_strided_slice %174 {offsets = [8, 4], sizes = [1, 20], strides = [1, 1]} : vector<12x24xf32> to vector<1x20xf32>
      %396 = vector.extract_strided_slice %174 {offsets = [9, 4], sizes = [1, 20], strides = [1, 1]} : vector<12x24xf32> to vector<1x20xf32>
      %397 = vector.extract_strided_slice %174 {offsets = [10, 4], sizes = [1, 20], strides = [1, 1]} : vector<12x24xf32> to vector<1x20xf32>
      %398 = vector.extract_strided_slice %174 {offsets = [11, 4], sizes = [1, 20], strides = [1, 1]} : vector<12x24xf32> to vector<1x20xf32>
      %399 = tpu.concatenate %391, %392, %393, %394, %395, %396, %397, %398 in 1 : vector<1x20xf32>, vector<1x20xf32>, vector<1x20xf32>, vector<1x20xf32>, vector<1x20xf32>, vector<1x20xf32>, vector<1x20xf32>, vector<1x20xf32> -> vector<1x160xf32>
      %400 = tpu.concatenate %183, %192, %201, %210, %219, %228, %237, %246, %255, %264, %273, %282, %291, %300, %309, %318 in 0 : vector<1x160xf32>, vector<1x160xf32>, vector<1x160xf32>, vector<1x160xf32>, vector<1x160xf32>, vector<1x160xf32>, vector<1x160xf32>, vector<1x160xf32>, vector<1x160xf32>, vector<1x160xf32>, vector<1x160xf32>, vector<1x160xf32>, vector<1x160xf32>, vector<1x160xf32>, vector<1x160xf32>, vector<1x160xf32> -> vector<16x160xf32>
      %401 = tpu.concatenate %327, %336, %345, %354, %363, %372, %381, %390, %399 in 0 : vector<1x160xf32>, vector<1x160xf32>, vector<1x160xf32>, vector<1x160xf32>, vector<1x160xf32>, vector<1x160xf32>, vector<1x160xf32>, vector<1x160xf32>, vector<1x160xf32> -> vector<9x160xf32>
      %402 = tpu.concatenate %400, %401 in 0 : vector<16x160xf32>, vector<9x160xf32> -> vector<25x160xf32>
      %cst_33 = arith.constant dense<0.000000e+00> : vector<64x160xf32>
      %403 = tpu.matmul %19, %402, %cst_33 {dimension_numbers = #tpu.dot_dimension_numbers<[1], [0], [0], [1], [0, 0, 1, 1], [], []>} : vector<64x25xf32>, vector<25x160xf32>, vector<64x160xf32> -> vector<64x160xf32>
      %404 = arith.mulf %403, %403 : vector<64x160xf32>
      %cst_34 = arith.constant 9.99999997E-7 : f32
      %405 = vector.broadcast %cst_34 : f32 to vector<64x160xf32>
      %406 = arith.addf %404, %405 : vector<64x160xf32>
      %407 = math.sqrt %406 : vector<64x160xf32>
      %408 = vector.shape_cast %407 : vector<64x160xf32> to vector<1x64x160xf32>
      %cst_35 = arith.constant dense<0.000000e+00> : vector<1xf32>
      %409 = vector.multi_reduction <add>, %408, %cst_35 [1, 2] : vector<1x64x160xf32> to vector<1xf32>
      %410 = vector.shape_cast %409 : vector<1xf32> to vector<1x1x1xf32>
      %411 = vector.extract %410[0, 0, 0] : f32 from vector<1x1x1xf32>
      %412 = arith.addf %arg8, %411 : f32
      scf.yield %412 : f32
    }
    %c2_i32_16 = arith.constant 2 : i32
    %c16 = arith.constant 16 : index
    %c0_17 = arith.constant 0 : index
    %22 = vector.load %arg6[%c16, %c0_17] : memref<24x24xf32, #tpu.memory_space<vmem>>, vector<8x24xf32>
    %23 = vector.extract_strided_slice %22 {offsets = [0, 0], sizes = [1, 20], strides = [1, 1]} : vector<8x24xf32> to vector<1x20xf32>
    %24 = vector.extract_strided_slice %22 {offsets = [1, 0], sizes = [1, 20], strides = [1, 1]} : vector<8x24xf32> to vector<1x20xf32>
    %25 = vector.extract_strided_slice %22 {offsets = [2, 0], sizes = [1, 20], strides = [1, 1]} : vector<8x24xf32> to vector<1x20xf32>
    %26 = vector.extract_strided_slice %22 {offsets = [3, 0], sizes = [1, 20], strides = [1, 1]} : vector<8x24xf32> to vector<1x20xf32>
    %27 = tpu.concatenate %23, %24, %25, %26 in 1 : vector<1x20xf32>, vector<1x20xf32>, vector<1x20xf32>, vector<1x20xf32> -> vector<1x80xf32>
    %28 = vector.extract_strided_slice %22 {offsets = [0, 1], sizes = [1, 20], strides = [1, 1]} : vector<8x24xf32> to vector<1x20xf32>
    %29 = vector.extract_strided_slice %22 {offsets = [1, 1], sizes = [1, 20], strides = [1, 1]} : vector<8x24xf32> to vector<1x20xf32>
    %30 = vector.extract_strided_slice %22 {offsets = [2, 1], sizes = [1, 20], strides = [1, 1]} : vector<8x24xf32> to vector<1x20xf32>
    %31 = vector.extract_strided_slice %22 {offsets = [3, 1], sizes = [1, 20], strides = [1, 1]} : vector<8x24xf32> to vector<1x20xf32>
    %32 = tpu.concatenate %28, %29, %30, %31 in 1 : vector<1x20xf32>, vector<1x20xf32>, vector<1x20xf32>, vector<1x20xf32> -> vector<1x80xf32>
    %33 = vector.extract_strided_slice %22 {offsets = [0, 2], sizes = [1, 20], strides = [1, 1]} : vector<8x24xf32> to vector<1x20xf32>
    %34 = vector.extract_strided_slice %22 {offsets = [1, 2], sizes = [1, 20], strides = [1, 1]} : vector<8x24xf32> to vector<1x20xf32>
    %35 = vector.extract_strided_slice %22 {offsets = [2, 2], sizes = [1, 20], strides = [1, 1]} : vector<8x24xf32> to vector<1x20xf32>
    %36 = vector.extract_strided_slice %22 {offsets = [3, 2], sizes = [1, 20], strides = [1, 1]} : vector<8x24xf32> to vector<1x20xf32>
    %37 = tpu.concatenate %33, %34, %35, %36 in 1 : vector<1x20xf32>, vector<1x20xf32>, vector<1x20xf32>, vector<1x20xf32> -> vector<1x80xf32>
    %38 = vector.extract_strided_slice %22 {offsets = [0, 3], sizes = [1, 20], strides = [1, 1]} : vector<8x24xf32> to vector<1x20xf32>
    %39 = vector.extract_strided_slice %22 {offsets = [1, 3], sizes = [1, 20], strides = [1, 1]} : vector<8x24xf32> to vector<1x20xf32>
    %40 = vector.extract_strided_slice %22 {offsets = [2, 3], sizes = [1, 20], strides = [1, 1]} : vector<8x24xf32> to vector<1x20xf32>
    %41 = vector.extract_strided_slice %22 {offsets = [3, 3], sizes = [1, 20], strides = [1, 1]} : vector<8x24xf32> to vector<1x20xf32>
    %42 = tpu.concatenate %38, %39, %40, %41 in 1 : vector<1x20xf32>, vector<1x20xf32>, vector<1x20xf32>, vector<1x20xf32> -> vector<1x80xf32>
    %43 = vector.extract_strided_slice %22 {offsets = [0, 4], sizes = [1, 20], strides = [1, 1]} : vector<8x24xf32> to vector<1x20xf32>
    %44 = vector.extract_strided_slice %22 {offsets = [1, 4], sizes = [1, 20], strides = [1, 1]} : vector<8x24xf32> to vector<1x20xf32>
    %45 = vector.extract_strided_slice %22 {offsets = [2, 4], sizes = [1, 20], strides = [1, 1]} : vector<8x24xf32> to vector<1x20xf32>
    %46 = vector.extract_strided_slice %22 {offsets = [3, 4], sizes = [1, 20], strides = [1, 1]} : vector<8x24xf32> to vector<1x20xf32>
    %47 = tpu.concatenate %43, %44, %45, %46 in 1 : vector<1x20xf32>, vector<1x20xf32>, vector<1x20xf32>, vector<1x20xf32> -> vector<1x80xf32>
    %48 = vector.extract_strided_slice %22 {offsets = [1, 0], sizes = [1, 20], strides = [1, 1]} : vector<8x24xf32> to vector<1x20xf32>
    %49 = vector.extract_strided_slice %22 {offsets = [2, 0], sizes = [1, 20], strides = [1, 1]} : vector<8x24xf32> to vector<1x20xf32>
    %50 = vector.extract_strided_slice %22 {offsets = [3, 0], sizes = [1, 20], strides = [1, 1]} : vector<8x24xf32> to vector<1x20xf32>
    %51 = vector.extract_strided_slice %22 {offsets = [4, 0], sizes = [1, 20], strides = [1, 1]} : vector<8x24xf32> to vector<1x20xf32>
    %52 = tpu.concatenate %48, %49, %50, %51 in 1 : vector<1x20xf32>, vector<1x20xf32>, vector<1x20xf32>, vector<1x20xf32> -> vector<1x80xf32>
    %53 = vector.extract_strided_slice %22 {offsets = [1, 1], sizes = [1, 20], strides = [1, 1]} : vector<8x24xf32> to vector<1x20xf32>
    %54 = vector.extract_strided_slice %22 {offsets = [2, 1], sizes = [1, 20], strides = [1, 1]} : vector<8x24xf32> to vector<1x20xf32>
    %55 = vector.extract_strided_slice %22 {offsets = [3, 1], sizes = [1, 20], strides = [1, 1]} : vector<8x24xf32> to vector<1x20xf32>
    %56 = vector.extract_strided_slice %22 {offsets = [4, 1], sizes = [1, 20], strides = [1, 1]} : vector<8x24xf32> to vector<1x20xf32>
    %57 = tpu.concatenate %53, %54, %55, %56 in 1 : vector<1x20xf32>, vector<1x20xf32>, vector<1x20xf32>, vector<1x20xf32> -> vector<1x80xf32>
    %58 = vector.extract_strided_slice %22 {offsets = [1, 2], sizes = [1, 20], strides = [1, 1]} : vector<8x24xf32> to vector<1x20xf32>
    %59 = vector.extract_strided_slice %22 {offsets = [2, 2], sizes = [1, 20], strides = [1, 1]} : vector<8x24xf32> to vector<1x20xf32>
    %60 = vector.extract_strided_slice %22 {offsets = [3, 2], sizes = [1, 20], strides = [1, 1]} : vector<8x24xf32> to vector<1x20xf32>
    %61 = vector.extract_strided_slice %22 {offsets = [4, 2], sizes = [1, 20], strides = [1, 1]} : vector<8x24xf32> to vector<1x20xf32>
    %62 = tpu.concatenate %58, %59, %60, %61 in 1 : vector<1x20xf32>, vector<1x20xf32>, vector<1x20xf32>, vector<1x20xf32> -> vector<1x80xf32>
    %63 = vector.extract_strided_slice %22 {offsets = [1, 3], sizes = [1, 20], strides = [1, 1]} : vector<8x24xf32> to vector<1x20xf32>
    %64 = vector.extract_strided_slice %22 {offsets = [2, 3], sizes = [1, 20], strides = [1, 1]} : vector<8x24xf32> to vector<1x20xf32>
    %65 = vector.extract_strided_slice %22 {offsets = [3, 3], sizes = [1, 20], strides = [1, 1]} : vector<8x24xf32> to vector<1x20xf32>
    %66 = vector.extract_strided_slice %22 {offsets = [4, 3], sizes = [1, 20], strides = [1, 1]} : vector<8x24xf32> to vector<1x20xf32>
    %67 = tpu.concatenate %63, %64, %65, %66 in 1 : vector<1x20xf32>, vector<1x20xf32>, vector<1x20xf32>, vector<1x20xf32> -> vector<1x80xf32>
    %68 = vector.extract_strided_slice %22 {offsets = [1, 4], sizes = [1, 20], strides = [1, 1]} : vector<8x24xf32> to vector<1x20xf32>
    %69 = vector.extract_strided_slice %22 {offsets = [2, 4], sizes = [1, 20], strides = [1, 1]} : vector<8x24xf32> to vector<1x20xf32>
    %70 = vector.extract_strided_slice %22 {offsets = [3, 4], sizes = [1, 20], strides = [1, 1]} : vector<8x24xf32> to vector<1x20xf32>
    %71 = vector.extract_strided_slice %22 {offsets = [4, 4], sizes = [1, 20], strides = [1, 1]} : vector<8x24xf32> to vector<1x20xf32>
    %72 = tpu.concatenate %68, %69, %70, %71 in 1 : vector<1x20xf32>, vector<1x20xf32>, vector<1x20xf32>, vector<1x20xf32> -> vector<1x80xf32>
    %73 = vector.extract_strided_slice %22 {offsets = [2, 0], sizes = [1, 20], strides = [1, 1]} : vector<8x24xf32> to vector<1x20xf32>
    %74 = vector.extract_strided_slice %22 {offsets = [3, 0], sizes = [1, 20], strides = [1, 1]} : vector<8x24xf32> to vector<1x20xf32>
    %75 = vector.extract_strided_slice %22 {offsets = [4, 0], sizes = [1, 20], strides = [1, 1]} : vector<8x24xf32> to vector<1x20xf32>
    %76 = vector.extract_strided_slice %22 {offsets = [5, 0], sizes = [1, 20], strides = [1, 1]} : vector<8x24xf32> to vector<1x20xf32>
    %77 = tpu.concatenate %73, %74, %75, %76 in 1 : vector<1x20xf32>, vector<1x20xf32>, vector<1x20xf32>, vector<1x20xf32> -> vector<1x80xf32>
    %78 = vector.extract_strided_slice %22 {offsets = [2, 1], sizes = [1, 20], strides = [1, 1]} : vector<8x24xf32> to vector<1x20xf32>
    %79 = vector.extract_strided_slice %22 {offsets = [3, 1], sizes = [1, 20], strides = [1, 1]} : vector<8x24xf32> to vector<1x20xf32>
    %80 = vector.extract_strided_slice %22 {offsets = [4, 1], sizes = [1, 20], strides = [1, 1]} : vector<8x24xf32> to vector<1x20xf32>
    %81 = vector.extract_strided_slice %22 {offsets = [5, 1], sizes = [1, 20], strides = [1, 1]} : vector<8x24xf32> to vector<1x20xf32>
    %82 = tpu.concatenate %78, %79, %80, %81 in 1 : vector<1x20xf32>, vector<1x20xf32>, vector<1x20xf32>, vector<1x20xf32> -> vector<1x80xf32>
    %83 = vector.extract_strided_slice %22 {offsets = [2, 2], sizes = [1, 20], strides = [1, 1]} : vector<8x24xf32> to vector<1x20xf32>
    %84 = vector.extract_strided_slice %22 {offsets = [3, 2], sizes = [1, 20], strides = [1, 1]} : vector<8x24xf32> to vector<1x20xf32>
    %85 = vector.extract_strided_slice %22 {offsets = [4, 2], sizes = [1, 20], strides = [1, 1]} : vector<8x24xf32> to vector<1x20xf32>
    %86 = vector.extract_strided_slice %22 {offsets = [5, 2], sizes = [1, 20], strides = [1, 1]} : vector<8x24xf32> to vector<1x20xf32>
    %87 = tpu.concatenate %83, %84, %85, %86 in 1 : vector<1x20xf32>, vector<1x20xf32>, vector<1x20xf32>, vector<1x20xf32> -> vector<1x80xf32>
    %88 = vector.extract_strided_slice %22 {offsets = [2, 3], sizes = [1, 20], strides = [1, 1]} : vector<8x24xf32> to vector<1x20xf32>
    %89 = vector.extract_strided_slice %22 {offsets = [3, 3], sizes = [1, 20], strides = [1, 1]} : vector<8x24xf32> to vector<1x20xf32>
    %90 = vector.extract_strided_slice %22 {offsets = [4, 3], sizes = [1, 20], strides = [1, 1]} : vector<8x24xf32> to vector<1x20xf32>
    %91 = vector.extract_strided_slice %22 {offsets = [5, 3], sizes = [1, 20], strides = [1, 1]} : vector<8x24xf32> to vector<1x20xf32>
    %92 = tpu.concatenate %88, %89, %90, %91 in 1 : vector<1x20xf32>, vector<1x20xf32>, vector<1x20xf32>, vector<1x20xf32> -> vector<1x80xf32>
    %93 = vector.extract_strided_slice %22 {offsets = [2, 4], sizes = [1, 20], strides = [1, 1]} : vector<8x24xf32> to vector<1x20xf32>
    %94 = vector.extract_strided_slice %22 {offsets = [3, 4], sizes = [1, 20], strides = [1, 1]} : vector<8x24xf32> to vector<1x20xf32>
    %95 = vector.extract_strided_slice %22 {offsets = [4, 4], sizes = [1, 20], strides = [1, 1]} : vector<8x24xf32> to vector<1x20xf32>
    %96 = vector.extract_strided_slice %22 {offsets = [5, 4], sizes = [1, 20], strides = [1, 1]} : vector<8x24xf32> to vector<1x20xf32>
    %97 = tpu.concatenate %93, %94, %95, %96 in 1 : vector<1x20xf32>, vector<1x20xf32>, vector<1x20xf32>, vector<1x20xf32> -> vector<1x80xf32>
    %98 = vector.extract_strided_slice %22 {offsets = [3, 0], sizes = [1, 20], strides = [1, 1]} : vector<8x24xf32> to vector<1x20xf32>
    %99 = vector.extract_strided_slice %22 {offsets = [4, 0], sizes = [1, 20], strides = [1, 1]} : vector<8x24xf32> to vector<1x20xf32>
    %100 = vector.extract_strided_slice %22 {offsets = [5, 0], sizes = [1, 20], strides = [1, 1]} : vector<8x24xf32> to vector<1x20xf32>
    %101 = vector.extract_strided_slice %22 {offsets = [6, 0], sizes = [1, 20], strides = [1, 1]} : vector<8x24xf32> to vector<1x20xf32>
    %102 = tpu.concatenate %98, %99, %100, %101 in 1 : vector<1x20xf32>, vector<1x20xf32>, vector<1x20xf32>, vector<1x20xf32> -> vector<1x80xf32>
    %103 = vector.extract_strided_slice %22 {offsets = [3, 1], sizes = [1, 20], strides = [1, 1]} : vector<8x24xf32> to vector<1x20xf32>
    %104 = vector.extract_strided_slice %22 {offsets = [4, 1], sizes = [1, 20], strides = [1, 1]} : vector<8x24xf32> to vector<1x20xf32>
    %105 = vector.extract_strided_slice %22 {offsets = [5, 1], sizes = [1, 20], strides = [1, 1]} : vector<8x24xf32> to vector<1x20xf32>
    %106 = vector.extract_strided_slice %22 {offsets = [6, 1], sizes = [1, 20], strides = [1, 1]} : vector<8x24xf32> to vector<1x20xf32>
    %107 = tpu.concatenate %103, %104, %105, %106 in 1 : vector<1x20xf32>, vector<1x20xf32>, vector<1x20xf32>, vector<1x20xf32> -> vector<1x80xf32>
    %108 = vector.extract_strided_slice %22 {offsets = [3, 2], sizes = [1, 20], strides = [1, 1]} : vector<8x24xf32> to vector<1x20xf32>
    %109 = vector.extract_strided_slice %22 {offsets = [4, 2], sizes = [1, 20], strides = [1, 1]} : vector<8x24xf32> to vector<1x20xf32>
    %110 = vector.extract_strided_slice %22 {offsets = [5, 2], sizes = [1, 20], strides = [1, 1]} : vector<8x24xf32> to vector<1x20xf32>
    %111 = vector.extract_strided_slice %22 {offsets = [6, 2], sizes = [1, 20], strides = [1, 1]} : vector<8x24xf32> to vector<1x20xf32>
    %112 = tpu.concatenate %108, %109, %110, %111 in 1 : vector<1x20xf32>, vector<1x20xf32>, vector<1x20xf32>, vector<1x20xf32> -> vector<1x80xf32>
    %113 = vector.extract_strided_slice %22 {offsets = [3, 3], sizes = [1, 20], strides = [1, 1]} : vector<8x24xf32> to vector<1x20xf32>
    %114 = vector.extract_strided_slice %22 {offsets = [4, 3], sizes = [1, 20], strides = [1, 1]} : vector<8x24xf32> to vector<1x20xf32>
    %115 = vector.extract_strided_slice %22 {offsets = [5, 3], sizes = [1, 20], strides = [1, 1]} : vector<8x24xf32> to vector<1x20xf32>
    %116 = vector.extract_strided_slice %22 {offsets = [6, 3], sizes = [1, 20], strides = [1, 1]} : vector<8x24xf32> to vector<1x20xf32>
    %117 = tpu.concatenate %113, %114, %115, %116 in 1 : vector<1x20xf32>, vector<1x20xf32>, vector<1x20xf32>, vector<1x20xf32> -> vector<1x80xf32>
    %118 = vector.extract_strided_slice %22 {offsets = [3, 4], sizes = [1, 20], strides = [1, 1]} : vector<8x24xf32> to vector<1x20xf32>
    %119 = vector.extract_strided_slice %22 {offsets = [4, 4], sizes = [1, 20], strides = [1, 1]} : vector<8x24xf32> to vector<1x20xf32>
    %120 = vector.extract_strided_slice %22 {offsets = [5, 4], sizes = [1, 20], strides = [1, 1]} : vector<8x24xf32> to vector<1x20xf32>
    %121 = vector.extract_strided_slice %22 {offsets = [6, 4], sizes = [1, 20], strides = [1, 1]} : vector<8x24xf32> to vector<1x20xf32>
    %122 = tpu.concatenate %118, %119, %120, %121 in 1 : vector<1x20xf32>, vector<1x20xf32>, vector<1x20xf32>, vector<1x20xf32> -> vector<1x80xf32>
    %123 = vector.extract_strided_slice %22 {offsets = [4, 0], sizes = [1, 20], strides = [1, 1]} : vector<8x24xf32> to vector<1x20xf32>
    %124 = vector.extract_strided_slice %22 {offsets = [5, 0], sizes = [1, 20], strides = [1, 1]} : vector<8x24xf32> to vector<1x20xf32>
    %125 = vector.extract_strided_slice %22 {offsets = [6, 0], sizes = [1, 20], strides = [1, 1]} : vector<8x24xf32> to vector<1x20xf32>
    %126 = vector.extract_strided_slice %22 {offsets = [7, 0], sizes = [1, 20], strides = [1, 1]} : vector<8x24xf32> to vector<1x20xf32>
    %127 = tpu.concatenate %123, %124, %125, %126 in 1 : vector<1x20xf32>, vector<1x20xf32>, vector<1x20xf32>, vector<1x20xf32> -> vector<1x80xf32>
    %128 = vector.extract_strided_slice %22 {offsets = [4, 1], sizes = [1, 20], strides = [1, 1]} : vector<8x24xf32> to vector<1x20xf32>
    %129 = vector.extract_strided_slice %22 {offsets = [5, 1], sizes = [1, 20], strides = [1, 1]} : vector<8x24xf32> to vector<1x20xf32>
    %130 = vector.extract_strided_slice %22 {offsets = [6, 1], sizes = [1, 20], strides = [1, 1]} : vector<8x24xf32> to vector<1x20xf32>
    %131 = vector.extract_strided_slice %22 {offsets = [7, 1], sizes = [1, 20], strides = [1, 1]} : vector<8x24xf32> to vector<1x20xf32>
    %132 = tpu.concatenate %128, %129, %130, %131 in 1 : vector<1x20xf32>, vector<1x20xf32>, vector<1x20xf32>, vector<1x20xf32> -> vector<1x80xf32>
    %133 = vector.extract_strided_slice %22 {offsets = [4, 2], sizes = [1, 20], strides = [1, 1]} : vector<8x24xf32> to vector<1x20xf32>
    %134 = vector.extract_strided_slice %22 {offsets = [5, 2], sizes = [1, 20], strides = [1, 1]} : vector<8x24xf32> to vector<1x20xf32>
    %135 = vector.extract_strided_slice %22 {offsets = [6, 2], sizes = [1, 20], strides = [1, 1]} : vector<8x24xf32> to vector<1x20xf32>
    %136 = vector.extract_strided_slice %22 {offsets = [7, 2], sizes = [1, 20], strides = [1, 1]} : vector<8x24xf32> to vector<1x20xf32>
    %137 = tpu.concatenate %133, %134, %135, %136 in 1 : vector<1x20xf32>, vector<1x20xf32>, vector<1x20xf32>, vector<1x20xf32> -> vector<1x80xf32>
    %138 = vector.extract_strided_slice %22 {offsets = [4, 3], sizes = [1, 20], strides = [1, 1]} : vector<8x24xf32> to vector<1x20xf32>
    %139 = vector.extract_strided_slice %22 {offsets = [5, 3], sizes = [1, 20], strides = [1, 1]} : vector<8x24xf32> to vector<1x20xf32>
    %140 = vector.extract_strided_slice %22 {offsets = [6, 3], sizes = [1, 20], strides = [1, 1]} : vector<8x24xf32> to vector<1x20xf32>
    %141 = vector.extract_strided_slice %22 {offsets = [7, 3], sizes = [1, 20], strides = [1, 1]} : vector<8x24xf32> to vector<1x20xf32>
    %142 = tpu.concatenate %138, %139, %140, %141 in 1 : vector<1x20xf32>, vector<1x20xf32>, vector<1x20xf32>, vector<1x20xf32> -> vector<1x80xf32>
    %143 = vector.extract_strided_slice %22 {offsets = [4, 4], sizes = [1, 20], strides = [1, 1]} : vector<8x24xf32> to vector<1x20xf32>
    %144 = vector.extract_strided_slice %22 {offsets = [5, 4], sizes = [1, 20], strides = [1, 1]} : vector<8x24xf32> to vector<1x20xf32>
    %145 = vector.extract_strided_slice %22 {offsets = [6, 4], sizes = [1, 20], strides = [1, 1]} : vector<8x24xf32> to vector<1x20xf32>
    %146 = vector.extract_strided_slice %22 {offsets = [7, 4], sizes = [1, 20], strides = [1, 1]} : vector<8x24xf32> to vector<1x20xf32>
    %147 = tpu.concatenate %143, %144, %145, %146 in 1 : vector<1x20xf32>, vector<1x20xf32>, vector<1x20xf32>, vector<1x20xf32> -> vector<1x80xf32>
    %148 = tpu.concatenate %27, %32, %37, %42, %47, %52, %57, %62, %67, %72, %77, %82, %87, %92, %97, %102 in 0 : vector<1x80xf32>, vector<1x80xf32>, vector<1x80xf32>, vector<1x80xf32>, vector<1x80xf32>, vector<1x80xf32>, vector<1x80xf32>, vector<1x80xf32>, vector<1x80xf32>, vector<1x80xf32>, vector<1x80xf32>, vector<1x80xf32>, vector<1x80xf32>, vector<1x80xf32>, vector<1x80xf32>, vector<1x80xf32> -> vector<16x80xf32>
    %149 = tpu.concatenate %107, %112, %117, %122, %127, %132, %137, %142, %147 in 0 : vector<1x80xf32>, vector<1x80xf32>, vector<1x80xf32>, vector<1x80xf32>, vector<1x80xf32>, vector<1x80xf32>, vector<1x80xf32>, vector<1x80xf32>, vector<1x80xf32> -> vector<9x80xf32>
    %150 = tpu.concatenate %148, %149 in 0 : vector<16x80xf32>, vector<9x80xf32> -> vector<25x80xf32>
    %cst_18 = arith.constant dense<0.000000e+00> : vector<64x80xf32>
    %151 = tpu.matmul %19, %150, %cst_18 {dimension_numbers = #tpu.dot_dimension_numbers<[1], [0], [0], [1], [0, 0, 1, 1], [], []>} : vector<64x25xf32>, vector<25x80xf32>, vector<64x80xf32> -> vector<64x80xf32>
    %152 = arith.mulf %151, %151 : vector<64x80xf32>
    %cst_19 = arith.constant 9.99999997E-7 : f32
    %153 = vector.broadcast %cst_19 : f32 to vector<64x80xf32>
    %154 = arith.addf %152, %153 : vector<64x80xf32>
    %155 = math.sqrt %154 : vector<64x80xf32>
    %156 = vector.shape_cast %155 : vector<64x80xf32> to vector<1x64x80xf32>
    %cst_20 = arith.constant dense<0.000000e+00> : vector<1xf32>
    %157 = vector.multi_reduction <add>, %156, %cst_20 [1, 2] : vector<1x64x80xf32> to vector<1xf32>
    %158 = vector.shape_cast %157 : vector<1xf32> to vector<1x1x1xf32>
    %159 = vector.extract %158[0, 0, 0] : f32 from vector<1x1x1xf32>
    %160 = arith.addf %21, %159 : f32
    %c0_i32_21 = arith.constant 0 : i32
    %161 = arith.cmpi eq, %arg1, %c0_i32_21 : i32
    %c1_i32_22 = arith.constant 1 : i32
    %162 = arith.cmpi eq, %arg1, %c1_i32_22 : i32
    %cst_23 = arith.constant 5.866100e-01 : f32
    %cst_24 = arith.constant 1.144800e-01 : f32
    %163 = arith.select %162, %cst_23, %cst_24 : f32
    %cst_25 = arith.constant 2.989100e-01 : f32
    %164 = arith.select %161, %cst_25, %163 : f32
    %cst_26 = arith.constant 1.152000e+03 : f32
    %165 = arith.divf %18, %cst_26 : f32
    %cst_27 = arith.constant 7.812500e-06 : f32
    %166 = arith.mulf %cst_27, %160 : f32
    %167 = arith.addf %165, %166 : f32
    %168 = arith.mulf %164, %167 : f32
    %169 = vector.broadcast %168 : f32 to vector<1x1x1x128xf32>
    %c0_28 = arith.constant 0 : index
    %c0_29 = arith.constant 0 : index
    %c0_30 = arith.constant 0 : index
    %c0_31 = arith.constant 0 : index
    %170 = vector.load %arg5[%c0_28, %c0_29, %c0_30, %c0_31] : memref<1x1x1x128xf32, #tpu.memory_space<vmem>>, vector<1x1x1x128xf32>
    tpu.vector_store %arg5[%c0_28, %c0_29, %c0_30, %c0_31], %169 {strides = array<i32>} : memref<1x1x1x128xf32, #tpu.memory_space<vmem>>, vector<1x1x1x128xf32>,
    return
  }
  func.func @transform_0(%arg0: i32, %arg1: i32) -> (i32, i32, i32, i32) {
    %c0_i32 = arith.constant 0 : i32
    %c0_i32_0 = arith.constant 0 : i32
    %c0_i32_1 = arith.constant 0 : i32
    return %arg0, %arg1, %c0_i32, %c0_i32_0 : i32, i32, i32, i32
  }
  func.func @transform_1(%arg0: i32, %arg1: i32) -> (i32, i32, i32, i32) {
    %c0_i32 = arith.constant 0 : i32
    %c0_i32_0 = arith.constant 0 : i32
    %c0_i32_1 = arith.constant 0 : i32
    return %arg0, %arg1, %c0_i32, %c0_i32_0 : i32, i32, i32, i32
  }
  func.func @transform_2(%arg0: i32, %arg1: i32) -> (i32, i32) {
    %c0_i32 = arith.constant 0 : i32
    %c0_i32_0 = arith.constant 0 : i32
    %c0_i32_1 = arith.constant 0 : i32
    return %c0_i32, %c0_i32_0 : i32, i32
  }
  func.func @transform_3(%arg0: i32, %arg1: i32) -> (i32, i32, i32, i32) {
    %c0_i32 = arith.constant 0 : i32
    %c0_i32_0 = arith.constant 0 : i32
    %c0_i32_1 = arith.constant 0 : i32
    return %arg0, %arg1, %c0_i32, %c0_i32_0 : i32, i32, i32, i32
  }
}

</mosaic_0001>

<bundles_post_ra>
// kernel: tpu_custom_call.1
= control target key start
LH: loop header
LB: loop body
LE: loop exit
PB: predicated region body
PF: predicated region fallthrough
CT: control target
= control target key end

     0   :  { %s3162_s0 = inlined_call_operand.hbm [shape: f32[2,3,24,24], index: 0, kind: input, shape index: {}]   ;;  %s3163_s1 = inlined_call_operand.hbm [shape: f32[2,3,24,24], index: 1, kind: input, shape index: {}]   ;;  %s3164_s2 = inlined_call_operand.vmem [shape: f32[64,25], index: 2, kind: input, shape index: {}]   ;;  %s3165_s3 = inlined_call_operand.hbm [shape: f32[2,3,1,128], index: 3, kind: output, shape index: {}]  }
   0x1   :  { %3182 = sst [smem:[#allocation14_spill]] %s3162_s0 }
   0x2   :  { %3183 = sst [smem:[#allocation15_spill]] %s3163_s1 }
   0x3   :  { %8 = vsyncpa [#allocation4], 0 }
   0x4   :  { %10 = vsyncpa [#allocation4 + $0x1], 0 }
   0x5   :  { %11 = vsyncpa [#allocation7], 0 }
   0x6   :  { %13 = vsyncpa [#allocation7 + $0x1], 0 }
   0x7   :  { %14 = vsyncpa [#allocation5], 0 }
   0x8   :  { %16 = vsyncpa [#allocation5 + $0x1], 0  ;;  %s2215_s12 = smov 0   ;;  %s2217_s13 = smov 0  }
   0x9   :  { %s2219_s14 = smov 0   ;;  %s2221_s15 = smov 0  }
   0xa   :  { %s2223_s16 = smov 0   ;;  %s2225_s17 = smov 0  }
   0xb   :  { %s2227_s18 = smov 0   ;;  %s2229_s19 = smov 0  }
   0xc LB: > { %s1557_s20 = sadd.s32 4294967295, %s2120_s19   ;;  %s1558_s21 = sadd.s32 4294967294, %s2120_s19   ;;  %s2120_s19 = sphi %s2229_s19, %s22_s19   ;;  %s2116_s18 = sphi %s2227_s18, %s3254_s18   ;;  %s2112_s17 = sphi %s2225_s17, %s3253_s17   ;;  %s2108_s16 = sphi %s2223_s16, %s3252_s16   ;;  %s2104_s15 = sphi %s2221_s15, %s3251_s15   ;;  %s2100_s14 = sphi %s2219_s14, %s3250_s14   ;;  %s2096_s13 = sphi %s2217_s13, %s3249_s13   ;;  %s2092_s12 = sphi %s2215_s12, %s3248_s12  }
   0xd   : > { %s31_s22 = sadd.s32 1, %s2112_s17  ;;  %s34_s23 = sadd.s32 1, %s2116_s18 }
   0xe   : > { %p32_p0 = scmp.ge.s32.totalorder %s31_s22, 3  ;;  %s43_s24 = sadd.s32 1, %s2100_s14 }
   0xf   : > { %p50_p1 = scmp.ne.s32.totalorder %s2100_s14, %s2096_s13  ;;  %p51_p2 = scmp.eq.s32.totalorder %s2120_s19, 0 }
  0x10   : > { %s3256_s22 = smov (%p32_p0, %s31_s22), 0  ;;  %s3258_s23 = smov (!%p32_p0, %s34_s23), %s2116_s18 }
  0x11   : > { %3184 = sst [smem:[#allocation12_spill]] %s3256_s22  ;;  %s39_s25 = ssub.s32 %s2112_s17, %s3256_s22 }
  0x12   : > { %p2268_p3 = por %p51_p2, %p50_p1  ;;  %p36_p4 = scmp.ge.s32.totalorder %s3258_s23, 2 }
  0x13   : > { %p56_p5 = scmp.ne.s32.totalorder %s2096_s13, %s2092_s12  ;;  %p57_p6 = scmp.eq.s32.totalorder %s1557_s20, 0 }
  0x14   : > { %p131_p7 = scmp.eq.s32.totalorder %s1557_s20, 5  ;;  %s3260_s23 = smov (%p36_p4, %s3258_s23), 0 }
  0x15   : > { %3186 = sst [smem:[#allocation13_spill]] %s3260_s23  ;;  %p2276_p8 = por %p57_p6, %p56_p5 }
  0x16   : > { %p2280_p9 = por %p131_p7, %p50_p1  ;;  %s38_s29 = ssub.s32 %s2116_s18, %s3260_s23 }
  0x17   : > { %s3187_s27 = scalar_select %p2276_p8, 1, 0 }
  0x18   : > { %s3188_s28 = scalar_select %p2280_p9, 1, 0 }
  0x19   : > { %p137_p10 = scmp.eq.s32.totalorder %s1558_s21, 5  ;;  %s40_s30 = sor.u32 %s39_s25, %s38_s29 }
  0x1a   : > { %p41_p11 = scmp.eq.s32.totalorder %s40_s30, 0  ;;  %p1678_p13 = scmp.lt.s32.totalorder %s2120_s19, 6 }
  0x1b   : > { %p2286_p12 = por %p137_p10, %p56_p5  ;;  %s2292_s5 = sand.u32 1, %s2100_s14  }
  0x1c   : > { %s2295_s6 = scalar_select %p41_p11, %s2100_s14, %s43_s24  }
  0x1d   : > { %s3189_s4 = scalar_select %p2286_p12, 1, 0 }
  0x1e   : > { %s3166_s7 = smul.u32 24, %s2292_s5  ;;  %p2301_p0 = pnand %p1678_p13, %p2268_p3 }
  0x1f   : > { %s1648_s8 = smul.u32 3, %s2112_s17  ;;  %s3191_s0 = sld [smem:[#allocation14_spill]] }
  0x20   : > { %s1649_s10 = smul.u32 9, %s2116_s18  ;;  %s164_s11 = scalar_lea.vmem [#allocation3], %s3166_s7 }
  0x21   : > { %s173_s20 = sshll.u32 %s164_s11, 4  ;;  %s161_s30 = scalar_lea.sflag [#allocation4], %s2292_s5  ;;  %s2310_s20 = int_to_ptr.vmem [resolvable:$true] %s173_s20 }
  0x22   : > { %s2308_s21 = sadd.s32 %s1649_s10, %s1648_s8  ;;  %p1952_p2 = pneg %p2301_p0 }
  0x23   : > { %s3167_s24 = sshll.u32 %s2308_s21, 7 }
  0x25   : > { %s2318_s29 = scalar_lea.hbm %s3191_s0, %s3167_s24  ;;  %s1955_s11 = scalar_lea.hbm %s3191_s0, 2304 }
  0x26   : > { %s1950_s7 = scalar_lea.hbm %s2318_s29, 384  ;;  %p1956_p5 = scmp.lt.u32.totalorder %s2318_s29, %s3191_s0 }
  0x27   : > { %p1951_p1 = scmp.ne.s32.totalorder %s2318_s29, %s1950_s7  ;;  %p1957_p6 = scmp.lt.u32.totalorder %s1955_s11, %s1950_s7 }
  0x28   : > { %p1959_p10 = scmp.lt.u32.totalorder %s1950_s7, %s2318_s29 }
  0x29   : > { %p1953_p3 = pnand %p1952_p2, %p1951_p1  ;;  %p1958_p7 = por %p1957_p6, %p1956_p5 }
  0x2b   : > { %p1954_p4 = pneg %p1953_p3  ;;  %p1960_p11 = por %p1959_p10, %p1958_p7 }
  0x2d   : > { %p1961_p13 = pnand %p1960_p11, %p1954_p4 }
  0x2f   : > { %1964 = shalt.err (!%p1961_p13)
}
  0x30   : > { %s1965_s24 = scalar_lea.vmem %s2310_s20, 384  ;;  %s2130_s8 = smov [#allocation3]  }
  0x31   : > { %p1966_p1 = scmp.ne.s32.totalorder %s2310_s20, %s1965_s24  ;;  %s1970_s10 = sshll.u32 %s2130_s8, 4  ;;  %s1971_s10 = int_to_ptr.vmem [resolvable:$false] %s1970_s10 }
  0x32   : > { %s1972_s25 = scalar_lea.vmem %s1971_s10, 768  ;;  %p1973_p9 = scmp.lt.s32.totalorder %s2310_s20, %s1971_s10 }
  0x33   : > { %p1968_p3 = pnand %p1966_p1, %p1952_p2  ;;  %p1974_p5 = scmp.lt.s32.totalorder %s1972_s25, %s1965_s24 }
  0x35   : > { %p1969_p12 = pneg %p1968_p3  ;;  %p1975_p6 = por %p1974_p5, %p1973_p9 }
  0x37   : > { %p1976_p7 = pnand %p1975_p6, %p1969_p12 }
  0x39   : > { %1979 = shalt.err (!%p1976_p7)
}
  0x3a   : > { %s2131_s7 = smov 128   ;;  %s2132_s11 = smov 8  }
  0x3b   : > { %1670 = dma.hbm_to_vmem [thread:$0]  (!%p2301_p0), %s2318_s29, 384, %s2310_s20, %s161_s30, %s2131_s7, %s2131_s7, %s2132_s11  }
  0x3c   : > { %p1563_p9 = scmp.ge.s32.totalorder %s2120_s19, 1  ;;  %p204_p12 = scmp.lt.s32.totalorder %s2120_s19, 7 }
  0x3d   : > { %s3193_s26 = sshll.u32 %s2308_s21, 7  ;;  %s3194_s1 = sld [smem:[#allocation15_spill]] }
  0x3e   : > { %p2353_p4 = pnand %p1563_p9, %p204_p12  ;;  %s3195_s0 = smul.u32 24, %s2292_s5 }
  0x3f   : > { %s184_s20 = scalar_lea.sflag [#allocation7], %s2292_s5 }
  0x40   : > { %s187_s23 = scalar_lea.vmem [#allocation6], %s3195_s0 }
  0x41   : > { %s196_s22 = sshll.u32 %s187_s23, 4  ;;  %s2366_s22 = int_to_ptr.vmem [resolvable:$true] %s196_s22 }
  0x43   : > { %s2362_s25 = scalar_lea.hbm %s3194_s1, %s3193_s26  ;;  %s1985_s26 = scalar_lea.hbm %s3194_s1, 2304 }
  0x44   : > { %s1980_s29 = scalar_lea.hbm %s2362_s25, 384  ;;  %p1986_p1 = scmp.lt.u32.totalorder %s2362_s25, %s3194_s1 }
  0x45   : > { %p1981_p10 = scmp.ne.s32.totalorder %s2362_s25, %s1980_s29  ;;  %p1987_p3 = scmp.lt.u32.totalorder %s1985_s26, %s1980_s29 }
  0x46   : > { %p1989_p6 = scmp.lt.u32.totalorder %s1980_s29, %s2362_s25 }
  0x47   : > { %p1983_p11 = pnand %p1981_p10, %p1952_p2  ;;  %p1988_p5 = por %p1987_p3, %p1986_p1 }
  0x49   : > { %p1984_p13 = pneg %p1983_p11  ;;  %p1990_p7 = por %p1989_p6, %p1988_p5 }
  0x4b   : > { %p1991_p9 = pnand %p1990_p7, %p1984_p13 }
  0x4d   : > { %1994 = shalt.err (!%p1991_p9)
}
  0x4e   : > { %s1995_s0 = scalar_lea.vmem %s2366_s22, 384  ;;  %s2133_s23 = smov [#allocation6]  }
  0x4f   : > { %p1996_p12 = scmp.ne.s32.totalorder %s2366_s22, %s1995_s0  ;;  %s2000_s21 = sshll.u32 %s2133_s23, 4  ;;  %s2001_s21 = int_to_ptr.vmem [resolvable:$false] %s2000_s21 }
  0x50   : > { %s2002_s30 = scalar_lea.vmem %s2001_s21, 768  ;;  %p2003_p8 = scmp.lt.s32.totalorder %s2366_s22, %s2001_s21 }
  0x51   : > { %p1998_p10 = pnand %p1996_p12, %p1952_p2  ;;  %p2004_p1 = scmp.lt.s32.totalorder %s2002_s30, %s1995_s0 }
  0x53   : > { %p1999_p11 = pneg %p1998_p10  ;;  %p2005_p3 = por %p2004_p1, %p2003_p8 }
  0x55   : > { %p2006_p5 = pnand %p2005_p3, %p1999_p11 }
  0x57   : > { %2009 = shalt.err (!%p2006_p5)
}
  0x58   : > { %1673 = dma.hbm_to_vmem [thread:$0]  (!%p2301_p0), %s2362_s25, 384, %s2366_s22, %s184_s20, %s2131_s7, %s2131_s7, %s2132_s11  }
  0x59   : > { %208 = sbr.rel (%p2353_p4) target bundleno = 1655 (0x677), region = 32  ;;  %s2400_s29 = sand.u32 (!%p2353_p4), 1, %s2096_s13  }
  0x5a   : > { %s1653_s26 = smul.u32 (!%p2353_p4), 24, %s2400_s29  ;;  %s211_s8 = scalar_lea.sflag (!%p2353_p4), [#allocation4], %s2400_s29 }
  0x5b   : > { %p3196_p8 = scmp.ne.s32.totalorder (!%p2353_p4), %s3187_s27, 0 }
  0x5c   : > { %s214_s9 = scalar_lea.vmem (!%p2353_p4), [#allocation3], %s1653_s26 }
  0x60   : > { %2079 = dma.done.wait (%p3196_p8), %s211_s8, 384  }
  0x61   : > { %2081 = vsyncadd (%p3196_p8), %s211_s8, 4294966912  ;;  %s220_s22 = scalar_lea.sflag [#allocation7], %s2400_s29  ;;  %s223_s5 = scalar_lea.vmem [#allocation6], %s1653_s26 }
  0x62   : > { %2083 = dma.done.wait (%p3196_p8), %s220_s22, 384  }
  0x63   : > { %2085 = vsyncadd (%p3196_p8), %s220_s22, 4294966912  ;;  %v2416_v0 = vld [vmem:[%s3164_s2] sm:$0xff]  ;;  %v2421_v1 = vld [vmem:[%s3164_s2 + $0x8] sm:$0xff]  ;;  %vm271_vm0 = vcmask 195584   ;;  %s2456_s24 = smov 0.0   ;;  %s2458_s25 = smov 0  }
  0x64   : > { %v2426_v2 = vld [vmem:[%s3164_s2 + $0x10] sm:$0xff]  ;;  %v2431_v3 = vld [vmem:[%s3164_s2 + $0x18] sm:$0xff]  ;;  %v2436_v4 = vld [vmem:[%s3164_s2 + $0x20] sm:$0xff] }
  0x65   : > { %v2441_v5 = vld [vmem:[%s3164_s2 + $0x28] sm:$0xff]  ;;  %v2446_v6 = vld [vmem:[%s3164_s2 + $0x30] sm:$0xff]  ;;  %v2451_v7 = vld [vmem:[%s3164_s2 + $0x38] sm:$0xff] }
  0x66   : > { %v250_v8 = vld [vmem:[%s214_s9] sm:$0xff]  ;;  %v251_v9 = vld [vmem:[%s214_s9 + $0x8] sm:$0xff]  ;;  %v252_v10 = vld [vmem:[%s214_s9 + $0x10] sm:$0xff] }
  0x67   : > { %v253_v11 = vmax.f32 %v250_v8, 0.0  ;;  %v259_v12 = vld [vmem:[%s223_s5] sm:$0xff]  ;;  %v254_v13 = vmax.f32 %v251_v9, 0.0  ;;  %v255_v14 = vmax.f32 %v252_v10, 0.0  ;;  %v260_v15 = vld [vmem:[%s223_s5 + $0x8] sm:$0xff]  ;;  %v261_v16 = vld [vmem:[%s223_s5 + $0x10] sm:$0xff] }
  0x68   : > { %v262_v17 = vmax.f32 %v259_v12, 0.0  ;;  %v263_v19 = vmax.f32 %v260_v15, 0.0  ;;  %v264_v20 = vmax.f32 %v261_v16, 0.0 }
  0x69   : > { %v256_v18 = vmin.f32 %v253_v11, 1.0  ;;  %v257_v21 = vmin.f32 %v254_v13, 1.0  ;;  %v258_v22 = vmin.f32 %v255_v14, 1.0 }
  0x6a   : > { %v265_v23 = vmin.f32 %v262_v17, 1.0  ;;  %v266_v24 = vmin.f32 %v263_v19, 1.0  ;;  %v267_v25 = vmin.f32 %v264_v20, 1.0 }
  0x6c   : > { %v268_v26 = vsub.f32 %v256_v18, %v265_v23  ;;  %v269_v27 = vsub.f32 %v257_v21, %v266_v24  ;;  %v270_v28 = vsub.f32 %v258_v22, %v267_v25 }
  0x6e   : > { %272 = vst.msk [vmem:[#allocation2] sm:$0xff] %vm271_vm0, %v268_v26  ;;  %v275_v29 = vand.u32 2147483647, %v268_v26  ;;  %273 = vst.msk [vmem:[#allocation2 + $0x8] sm:$0xff] %vm271_vm0, %v269_v27  ;;  %v276_v30 = vand.u32 2147483647, %v269_v27 }
  0x6f   : > { %274 = vst.msk [vmem:[#allocation2 + $0x10] sm:$0xff] %vm271_vm0, %v270_v28  ;;  %v277_v31 = vand.u32 2147483647, %v270_v28 }
  0x70   : > { %v278_v32 = vsel %vm271_vm0, %v275_v29, 0.0  ;;  %v279_v33 = vsel %vm271_vm0, %v276_v30, 0.0 }
  0x71   : > { %v281_v34 = vsel %vm271_vm0, %v277_v31, 0.0  ;;  %v280_v35 = vadd.f32 %v279_v33, %v278_v32 }
  0x73   : > { %v282_v36 = vadd.f32 %v281_v34, %v280_v35 }
  0x75   : > { %283 = vadd.xlane.f32.xlu0 %v282_v36 }
 0x102   : > { %v284_v37 = vpop.xlane.xlu0 %283 }
 0x103   : > { %v285_v38 = vrot.slane %v284_v37, 4 }
 0x105   : > { %v286_v39 = vadd.f32 %v285_v38, %v284_v37 }
 0x107   : > { %v287_v40 = vrot.slane %v286_v39, 2 }
 0x109   : > { %v288_v41 = vadd.f32 %v287_v40, %v286_v39 }
 0x10b   : > { %v289_v42 = vrot.slane %v288_v41, 1 }
 0x10d   : > { %v290_v43 = vadd.f32 %v289_v42, %v288_v41 }
 0x10f   : > { %1654 = vpush %v290_v43 }
 0x140   : > { %s2453_s9 = spop %1654 }
 0x141 LB: >> { %s1564_s20 = sshll.u32 %s2128_s25, 3  ;;  %s2134_s0 = smov 125   ;;  %v3172_v62 = vmov 0.0   ;;  %vm340_vm1 = vcmask 162816   ;;  %vm342_vm2 = vcmask 326656   ;;  %vm344_vm3 = vcmask 490496   ;;  %s2128_s25 = sphi %s2458_s25, %s305_s25   ;;  %s2124_s24 = sphi %s2456_s24, %s3215_s24  }
 0x142   : >> { %s308_s10 = scalar_lea.vmem [#allocation2], %s1564_s20  ;;  %s2135_s23 = smov 127   ;;  %826 = vmatprep.mubr.f32.mxu0 %v3172_v62  ;;  %850 = vmatprep.mubr.f32.mxu1 %v3172_v62  ;;  %vm3175_vm4 = vcmask 654336   ;;  %vm348_vm5 = vcmask 818176   ;;  %vm350_vm6 = vcmask 982016   ;;  %vm352_vm7 = vcmask 97280  }
 0x143   : >> { %v2467_v44 = vld [vmem:[%s308_s10] sm:$0xff]  ;;  %s2136_s27 = smov 17   ;;  %s2137_s21 = smov 19   ;;  %v310_v48 = vld [vmem:[%s308_s10 + $0x8] sm:$0xf]  ;;  %vm658_vm8 = vcmask 1040384  }
 0x144   : >> { %416 = vrot.lane.b32.xlu1 %v2467_v44, %s2134_s0  ;;  %354 = vrot.lane.b32.xlu0 %v2467_v44, %s2135_s23  ;;  %v312_v45 = vrot.slane %v2467_v44, 1  ;;  %v316_v46 = vrot.slane %v2467_v44, 2  ;;  %s2138_s30 = smov 126   ;;  %s2139_s26 = smov 39   ;;  %v320_v47 = vrot.slane %v2467_v44, 3  ;;  %v324_v49 = vrot.slane %v2467_v44, 4 }
 0x145   : >> { %s2140_s8 = smov 37   ;;  %s2141_s22 = smov 18   ;;  %v2476_v50 = vrot.slane %v310_v48, 4  ;;  %v332_v52 = vrot.slane %v2467_v44, 6  ;;  %v500_v53 = vrot.slane %v310_v48, 6  ;;  %v328_v54 = vrot.slane %v2467_v44, 5 }
 0x146   : >> { %s2142_s7 = smov 59   ;;  %s2143_s11 = smov 20   ;;  %v526_v55 = vrot.slane %v310_v48, 5  ;;  %v336_v58 = vrot.slane %v2467_v44, 7  ;;  %v479_v59 = vrot.slane %v310_v48, 7  ;;  %vm3181_vm9 = vcmask 1041408  }
 0x147   : >> { %s2144_s20 = smov 57   ;;  %s2145_s0 = smov 38   ;;  %v1822_v51 = vpack.i.bf16 %v2476_v50, %v324_v49  ;;  %v1832_v56 = vpack.i.bf16 %v500_v53, %v332_v52  ;;  %vm3180_vm10 = vcmask 1042432   ;;  %vm3179_vm11 = vcmask 1043456  }
 0x148   : >> { %419 = vrot.lane.b32.xlu1 %v312_v45, %s2136_s27  ;;  %357 = vrot.lane.b32.xlu0 %v312_v45, %s2137_s21  ;;  %s2146_s23 = smov 16   ;;  %s2147_s27 = smov 124   ;;  %v1827_v57 = vpack.i.bf16 %v526_v55, %v328_v54  ;;  %v1837_v60 = vpack.i.bf16 %v479_v59, %v336_v58  ;;  %v1852_v61 = vpack.i.bf16 %v336_v58, %v479_v59  ;;  %vm3178_vm12 = vcmask 1044480  }
 0x149   : >> { %s2148_s21 = smov 79   ;;  %s2150_s10 = smov 77   ;;  %vm3177_vm13 = vcmask 1045504   ;;  %vm3176_vm14 = vcmask 1046528   ;;  %vm2174_vm15 = vmmov 1  }
 0x14a   : >> { %s2170_s5 = smov 116   ;;  %vm2776_vm0 = vmpackc.low %vm658_vm8, %vm2174_vm15  ;;  %s305_s25 = sadd.s32 1, %s2128_s25  }
 0x14b   : >> { %p302_p0 = scmp.ge.s32.totalorder %s305_s25, 2  }
 0x14c   : >> { %385 = vrot.lane.b32.xlu1 %v2467_v44, %s2138_s30  ;;  %360 = vrot.lane.b32.xlu0 %v316_v46, %s2139_s26  ;;  %s2149_s30 = smov 40   ;;  %s2151_s26 = smov 58  }
 0x14d   : > { %s2178_s25 = smov (%p302_p0), 19   ;;  %p1413_p2 = scmp.eq.s32.totalorder (%p302_p0), %s2104_s15, 1 }
 0x14e   : > { %p1412_p4 = scmp.eq.s32.totalorder (%p302_p0), %s2104_s15, 0  ;;  %p3244_p6 = scmp.ne.s32.totalorder (%p302_p0), %s3188_s28, 0 }
 0x150   : >> { %422 = vrot.lane.b32.xlu1 %v316_v46, %s2140_s8  ;;  %388 = vrot.lane.b32.xlu0 %v312_v45, %s2141_s22  ;;  %s2152_s8 = smov 60   ;;  %s2153_s22 = smov 36  }
 0x154   : >> { %363 = vrot.lane.b32.xlu1 %v320_v47, %s2142_s7  ;;  %313 = vrot.lane.b32.xlu0 %v312_v45, %s2143_s11  ;;  %s2154_s7 = smov 119   ;;  %s2155_s11 = smov 99  }
 0x158   : >> { %425 = vrot.lane.b32.xlu1 %v320_v47, %s2144_s20  ;;  %391 = vrot.lane.b32.xlu0 %v316_v46, %s2145_s0  ;;  %s2156_s20 = smov 78   ;;  %s2157_s0 = smov 11  }
 0x15c   : >> { %450 = vrot.lane.b32.xlu1 %v312_v45, %s2146_s23  ;;  %447 = vrot.lane.b32.xlu0 %v2467_v44, %s2147_s27  ;;  %s2158_s23 = smov 117   ;;  %s2159_s27 = smov 97  }
 0x160   : >> { %1823 = vrot.lane.b32.xlu1 %v1822_v51, %s2148_s21  ;;  %317 = vrot.lane.b32.xlu0 %v316_v46, %s2149_s30  ;;  %s2160_s21 = smov 9   ;;  %s2161_s30 = smov 56  }
 0x164   : >> { %428 = vrot.lane.b32.xlu1 %v324_v49, %s2150_s10  ;;  %394 = vrot.lane.b32.xlu0 %v320_v47, %s2151_s26  ;;  %s2162_s26 = smov 98  }
 0x168   : >> { %321 = vrot.lane.b32.xlu1 %v320_v47, %s2152_s8  ;;  %453 = vrot.lane.b32.xlu0 %v316_v46, %s2153_s22  ;;  %s2163_s8 = smov 80   ;;  %s2164_s22 = smov 10  }
 0x16c   : >> { %1833 = vrot.lane.b32.xlu1 %v1832_v56, %s2154_s7  ;;  %1828 = vrot.lane.b32.xlu0 %v1827_v57, %s2155_s11  ;;  %s2165_s7 = smov 118   ;;  %s2166_s11 = smov 100  }
 0x170   : >> { %397 = vrot.lane.b32.xlu1 %v324_v49, %s2156_s20  ;;  %1838 = vrot.lane.b32.xlu0 %v1837_v60, %s2157_s0  ;;  %s2167_s0 = smov 76  }
 0x174   : >> { %1848 = vrot.lane.b32.xlu1 %v1832_v56, %s2158_s23  ;;  %1843 = vrot.lane.b32.xlu0 %v1827_v57, %s2159_s27  ;;  %s2168_s23 = smov 12   ;;  %s2169_s27 = smov 120  }
 0x178   : >> { %1853 = vrot.lane.b32.xlu1 %v1852_v61, %s2160_s21  ;;  %456 = vrot.lane.b32.xlu0 %v320_v47, %s2161_s30  ;;  %s2171_s21 = smov 96   ;;  %s2172_s30 = smov 8  }
 0x17c   : >> { %1858 = vrot.lane.b32.xlu1 %v1827_v57, %s2162_s26  ;;  %325 = vrot.lane.b32.xlu0 %v324_v49, %s2163_s8  ;;  %s2176_s26 = smov (%p302_p0), 127  }
 0x180   : >> { %1868 = vrot.lane.b32.xlu1 %v1837_v60, %s2164_s22  ;;  %1863 = vrot.lane.b32.xlu0 %v1832_v56, %s2165_s7  ;;  %s2180_s22 = smov (%p302_p0), 39   ;;  %s2181_s7 = smov (%p302_p0), 37  }
 0x184   : >> { %1873 = vrot.lane.b32.xlu1 %v1827_v57, %s2166_s11  ;;  %459 = vrot.lane.b32.xlu0 %v324_v49, %s2167_s0  ;;  %s2182_s11 = smov (%p302_p0), 18  }
 0x188   : >> { %1883 = vrot.lane.b32.xlu1 %v1837_v60, %s2168_s23  ;;  %1878 = vrot.lane.b32.xlu0 %v1832_v56, %s2169_s27  ;;  %s2184_s23 = smov (%p302_p0), 20   ;;  %s2185_s27 = smov (%p302_p0), 57  }
 0x18c   : >> { %1893 = vrot.lane.b32.xlu1 %v1832_v56, %s2170_s5  ;;  %1888 = vrot.lane.b32.xlu0 %v1827_v57, %s2171_s21  ;;  %s2186_s21 = smov (%p302_p0), 38  }
 0x190   : >> { %553 = vrot.lane.b32.xlu1 %v2476_v50, %s2163_s8  ;;  %1898 = vrot.lane.b32.xlu0 %v1852_v61, %s2172_s30  ;;  %s2177_s8 = smov (%p302_p0), 17   ;;  %s2187_s30 = smov (%p302_p0), 16  }
 0x194   : >> { %571 = vrot.lane.b32.xlu1 %v2476_v50, %s2150_s10  ;;  %565 = vrot.lane.b32.xlu0 %v2476_v50, %s2156_s20  ;;  %s2175_s20 = smov (%p302_p0), 125  }
 0x198   : >> { %577 = vrot.lane.b32.xlu0 %v2476_v50, %s2167_s0  ;;  %s2183_s0 = smov (%p302_p0), 59  }
 0x1b6   : >> { %v417_v63 = vpop.permute.xlu1 %416  ;;  %v355_v8 = vpop.permute.xlu0 %354 }
 0x1ba   : >> { %v420_v9 = vpop.permute.xlu1 %419  ;;  %v358_v10 = vpop.permute.xlu0 %357 }
 0x1bb   : >> { %v440_v11 = vsel %vm340_vm1, %v417_v63, %v420_v9  ;;  %v378_v12 = vsel %vm340_vm1, %v355_v8, %v358_v10 }
 0x1be   : >> { %v386_v13 = vpop.permute.xlu1 %385  ;;  %v361_v14 = vpop.permute.xlu0 %360 }
 0x1bf   : >> { %v379_v15 = vsel %vm342_vm2, %v378_v12, %v361_v14 }
 0x1c2   : >> { %v423_v16 = vpop.permute.xlu1 %422  ;;  %v389_v17 = vpop.permute.xlu0 %388 }
 0x1c3   : >> { %v441_v38 = vsel %vm342_vm2, %v440_v11, %v423_v16  ;;  %v409_v40 = vsel %vm340_vm1, %v386_v13, %v389_v17 }
 0x1c6   : >> { %v364_v18 = vpop.permute.xlu1 %363  ;;  %v314_v19 = vpop.permute.xlu0 %313 }
 0x1c7   : >> { %v380_v39 = vsel %vm344_vm3, %v379_v15, %v364_v18  ;;  %v341_v47 = vsel %vm340_vm1, %v2467_v44, %v314_v19 }
 0x1ca   : >> { %v426_v20 = vpop.permute.xlu1 %425  ;;  %v392_v21 = vpop.permute.xlu0 %391 }
 0x1cb   : >> { %v2508_v51 = vsel %vm344_vm3, %v441_v38, %v426_v20  ;;  %v410_v55 = vsel %vm342_vm2, %v409_v40, %v392_v21 }
 0x1ce   : >> { %v451_v22 = vpop.permute.xlu1 %450  ;;  %v448_v23 = vpop.permute.xlu0 %447 }
 0x1cf   : >> { %v471_v56 = vsel %vm340_vm1, %v448_v23, %v451_v22 }
 0x1d2   : >> { %v1824_v24 = vpop.permute.xlu1 %1823  ;;  %v318_v25 = vpop.permute.xlu0 %317 }
 0x1d3   : >> { %v1826_v32 = vunpack.i.h.bf16 %v1824_v24  ;;  %v1825_v33 = vunpack.i.l.bf16 %v1824_v24  ;;  %v343_v44 = vsel %vm342_vm2, %v341_v47, %v318_v25 }
 0x1d5   : >> { %v381_v41 = vsel %vm3175_vm4, %v380_v39, %v1825_v33  ;;  %v562_v42 = vsel %vm3175_vm4, %v380_v39, %v1826_v32 }
 0x1d6   : >> { %v429_v26 = vpop.permute.xlu1 %428  ;;  %v395_v27 = vpop.permute.xlu0 %394 }
 0x1d7   : >> { %v443_v58 = vsel %vm3175_vm4, %v2508_v51, %v429_v26  ;;  %v2533_v13 = vsel %vm344_vm3, %v410_v55, %v395_v27 }
 0x1da   : >> { %v322_v28 = vpop.permute.xlu1 %321  ;;  %v454_v29 = vpop.permute.xlu0 %453 }
 0x1db   : >> { %v2536_v14 = vsel %vm344_vm3, %v343_v44, %v322_v28  ;;  %v472_v17 = vsel %vm342_vm2, %v471_v56, %v454_v29 }
 0x1de   : >> { %v1834_v30 = vpop.permute.xlu1 %1833  ;;  %v1829_v31 = vpop.permute.xlu0 %1828 }
 0x1df   : >> { %v1831_v36 = vunpack.i.h.bf16 %v1829_v31  ;;  %v1830_v37 = vunpack.i.l.bf16 %v1829_v31  ;;  %v1836_v43 = vunpack.i.h.bf16 %v1834_v30  ;;  %v1835_v48 = vunpack.i.l.bf16 %v1834_v30 }
 0x1e1   : >> { %v535_v49 = vsel %vm348_vm5, %v381_v41, %v1831_v36  ;;  %v563_v50 = vsel %vm348_vm5, %v562_v42, %v1831_v36  ;;  %v382_v52 = vsel %vm348_vm5, %v381_v41, %v1830_v37 }
 0x1e2   : >> { %v398_v34 = vpop.permute.xlu1 %397  ;;  %v1839_v35 = vpop.permute.xlu0 %1838  ;;  %v2519_v59 = vsel %vm350_vm6, %v535_v49, %v1836_v43  ;;  %v2522_v60 = vsel %vm350_vm6, %v563_v50, %v1836_v43  ;;  %v2525_v9 = vsel %vm350_vm6, %v382_v52, %v1835_v48  ;;  %v2528_v10 = vsel %vm350_vm6, %v382_v52, %v1836_v43 }
 0x1e3   : >> { %v1841_v57 = vunpack.i.h.bf16 %v1839_v35  ;;  %v1840_v61 = vunpack.i.l.bf16 %v1839_v35  ;;  %v694_v18 = vrot.slane %v2519_v59, 3  ;;  %v709_v19 = vrot.slane %v2522_v60, 7 }
 0x1e4   : >> { %v585_v21 = vrot.slane %v2525_v9, 7  ;;  %v630_v22 = vrot.slane %v2528_v10, 7  ;;  %v412_v27 = vsel %vm3175_vm4, %v2533_v13, %v398_v34 }
 0x1e5   : >> { %v2546_v20 = vsel %vm352_vm7, %v1835_v48, %v1841_v57  ;;  %v2551_v23 = vsel %vm352_vm7, %v1836_v43, %v1841_v57  ;;  %v2554_v24 = vsel %vm352_vm7, %v1835_v48, %v1840_v61 }
 0x1e6   : >> { %v1849_v45 = vpop.permute.xlu1 %1848  ;;  %v2501_v46 = vpop.permute.xlu0 %1843  ;;  %v695_v37 = vrot.slane %v2551_v23, 3  ;;  %v586_v34 = vrot.slane %v2554_v24, 7 }
 0x1e7   : >> { %v1846_v53 = vunpack.i.h.bf16 %v2501_v46  ;;  %v1845_v54 = vunpack.i.l.bf16 %v2501_v46  ;;  %v2530_v11 = vunpack.i.h.bf16 %v1849_v45  ;;  %v1850_v12 = vunpack.i.l.bf16 %v1849_v45 }
 0x1e9   : >> { %v545_v15 = vsel %vm348_vm5, %v443_v58, %v1846_v53  ;;  %v444_v16 = vsel %vm348_vm5, %v443_v58, %v1845_v54 }
 0x1ea   : >> { %v1854_v63 = vpop.permute.xlu1 %1853  ;;  %v457_v8 = vpop.permute.xlu0 %456  ;;  %v546_v28 = vsel %vm350_vm6, %v545_v15, %v2530_v11  ;;  %v2563_v29 = vsel %vm350_vm6, %v444_v16, %v1850_v12  ;;  %v2573_v38 = vsel %vm350_vm6, %v444_v16, %v2530_v11 }
 0x1eb   : >> { %v1856_v30 = vunpack.i.h.bf16 %v1854_v63  ;;  %v1855_v32 = vunpack.i.l.bf16 %v1854_v63  ;;  %v704_v39 = vrot.slane %v546_v28, 1  ;;  %v597_v40 = vrot.slane %v2563_v29, 5 }
 0x1ec   : >> { %v624_v41 = vrot.slane %v2563_v29, 1  ;;  %v2595_v57 = vsel %vm344_vm3, %v472_v17, %v457_v8 }
 0x1ed   : >> { %v2579_v47 = vsel %vm352_vm7, %v1850_v12, %v1856_v30  ;;  %v2584_v52 = vsel %vm352_vm7, %v1850_v12, %v1855_v32  ;;  %v2588_v54 = vsel %vm352_vm7, %v2530_v11, %v1855_v32 }
 0x1ee   : >> { %v2556_v25 = vpop.permute.xlu1 %1858  ;;  %v326_v26 = vpop.permute.xlu0 %325  ;;  %v598_v61 = vrot.slane %v2579_v47, 5 }
 0x1ef   : >> { %v3174_v33 = vunpack.i.h.bf16 %v2556_v25  ;;  %v1860_v42 = vunpack.i.l.bf16 %v2556_v25 }
 0x1f1   : >> { %v540_v55 = vsel %vm348_vm5, %v412_v27, %v3174_v33  ;;  %v413_v63 = vsel %vm348_vm5, %v412_v27, %v1860_v42 }
 0x1f2   : >> { %v1869_v43 = vpop.permute.xlu1 %1868  ;;  %v1864_v45 = vpop.permute.xlu0 %1863 }
 0x1f3   : >> { %v1871_v48 = vunpack.i.h.bf16 %v1869_v43  ;;  %v2581_v49 = vunpack.i.h.bf16 %v1864_v45  ;;  %v1865_v50 = vunpack.i.l.bf16 %v1864_v45  ;;  %v1870_v56 = vunpack.i.l.bf16 %v1869_v43 }
 0x1f4   : >> { %v705_v45 = vrot.slane %v2588_v54, 1 }
 0x1f5   : >> { %v2599_v58 = vsel %vm352_vm7, %v2581_v49, %v1871_v48  ;;  %v541_v59 = vsel %vm350_vm6, %v540_v55, %v2581_v49  ;;  %v2612_v28 = vsel %vm350_vm6, %v413_v63, %v2581_v49  ;;  %v2615_v30 = vsel %vm350_vm6, %v413_v63, %v1865_v50 }
 0x1f6   : >> { %v699_v12 = vrot.slane %v541_v59, 2  ;;  %v700_v15 = vrot.slane %v2599_v58, 2  ;;  %v2606_v16 = vpop.permute.xlu1 %1873  ;;  %v460_v24 = vpop.permute.xlu0 %459  ;;  %v415_v27 = vsel %vm352_vm7, %v1865_v50, %v1870_v56  ;;  %v347_v55 = vsel %vm3175_vm4, %v2536_v14, %v326_v26 }
 0x1f7   : >> { %v1876_v42 = vunpack.i.h.bf16 %v2606_v16  ;;  %v1875_v43 = vunpack.i.l.bf16 %v2606_v16  ;;  %v2625_v59 = vsel %vm352_vm7, %v1865_v50, %v1871_v48  ;;  %v592_v35 = vrot.slane %v415_v27, 6 }
 0x1f8   : >> { %v719_v32 = vsel %vm658_vm8, %v694_v18, %v699_v12  ;;  %v591_v18 = vrot.slane %v2615_v30, 6  ;;  %v720_v16 = vsel %vm658_vm8, %v695_v37, %v700_v15 }
 0x1f9   : >> { %v721_v62 = vsel %vm3181_vm9, %v719_v32, %v704_v39  ;;  %v349_v48 = vsel %vm348_vm5, %v347_v55, %v1875_v43  ;;  %v530_v39 = vsel %vm348_vm5, %v347_v55, %v1876_v42  ;;  %v474_v32 = vsel %vm3175_vm4, %v2595_v57, %v460_v24 }
 0x1fa   : >> { %v1884_v12 = vpop.permute.xlu1 %1883  ;;  %v1879_v44 = vpop.permute.xlu0 %1878  ;;  %v722_v15 = vsel %vm3181_vm9, %v720_v16, %v705_v45 }
 0x1fb   : >> { %v1886_v17 = vunpack.i.h.bf16 %v1884_v12  ;;  %v1885_v31 = vunpack.i.l.bf16 %v1884_v12  ;;  %v1880_v36 = vunpack.i.l.bf16 %v1879_v44  ;;  %v1881_v50 = vunpack.i.h.bf16 %v1879_v44 }
 0x1fd   : >> { %v2638_v63 = vsel %vm350_vm6, %v349_v48, %v1880_v36  ;;  %v353_v37 = vsel %vm352_vm7, %v1880_v36, %v1885_v31  ;;  %v2643_v27 = vsel %vm352_vm7, %v1880_v36, %v1886_v17  ;;  %v504_v16 = vsel %vm350_vm6, %v349_v48, %v1881_v50 }
 0x1fe   : >> { %v659_v43 = vsel %vm658_vm8, %v2638_v63, %v585_v21  ;;  %v660_v44 = vsel %vm658_vm8, %v353_v37, %v586_v34  ;;  %v1894_v55 = vpop.permute.xlu1 %1893  ;;  %v2650_v12 = vpop.permute.xlu0 %1888  ;;  %v2661_v34 = vsel %vm352_vm7, %v1881_v50, %v1886_v17  ;;  %v609_v37 = vrot.slane %v2638_v63, 4 }
 0x1ff   : >> { %v662_v26 = vsel %vm3181_vm9, %v659_v43, %v591_v18  ;;  %v663_v31 = vsel %vm3181_vm9, %v660_v44, %v592_v35  ;;  %v2655_v45 = vunpack.i.h.bf16 %v1894_v55  ;;  %v1895_v36 = vunpack.i.l.bf16 %v1894_v55 }
 0x200   : >> { %v1891_v56 = vunpack.i.h.bf16 %v2650_v12  ;;  %v1890_v21 = vunpack.i.l.bf16 %v2650_v12  ;;  %v610_v24 = vrot.slane %v2643_v27, 4  ;;  %v2666_v18 = vsel %vm350_vm6, %v530_v39, %v1881_v50 }
 0x201   : >> { %v665_v35 = vsel %vm3180_vm10, %v662_v26, %v597_v40  ;;  %v655_v17 = vrot.slane %v2661_v34, 4  ;;  %v666_v63 = vsel %vm3180_vm10, %v663_v31, %v598_v61  ;;  %v654_v61 = vrot.slane %v2666_v18, 4 }
 0x202   : >> { %v550_v48 = vsel %vm348_vm5, %v474_v32, %v1891_v56  ;;  %v475_v43 = vsel %vm348_vm5, %v474_v32, %v1890_v21  ;;  %v554_v44 = vpop.permute.xlu1 %553  ;;  %v1899_v55 = vpop.permute.xlu0 %1898 }
 0x203   : >> { %v551_v39 = vsel %vm350_vm6, %v550_v48, %v2655_v45  ;;  %v476_v27 = vsel %vm350_vm6, %v475_v43, %v1895_v36  ;;  %v524_v40 = vsel %vm350_vm6, %v475_v43, %v2655_v45  ;;  %v556_v26 = vsel %vm3175_vm4, %v2536_v14, %v554_v44 }
 0x204   : >> { %v603_v32 = vrot.slane %v476_v27, 4  ;;  %v679_v12 = vsel %vm658_vm8, %v624_v41, %v476_v27  ;;  %v557_v47 = vsel %vm348_vm5, %v556_v26, %v1876_v42  ;;  %v723_v48 = vsel %vm3180_vm10, %v721_v62, %v551_v39 }
 0x205   : >> { %v681_v31 = vsel %vm3181_vm9, %v679_v12, %v504_v16  ;;  %v558_v21 = vsel %vm350_vm6, %v557_v47, %v1881_v50  ;;  %v1901_v43 = vunpack.i.h.bf16 %v1899_v55  ;;  %v648_v33 = vrot.slane %v524_v40, 4 }
 0x206   : >> { %v725_v14 = vsel %vm3179_vm11, %v723_v48, %v558_v21  ;;  %v1900_v44 = vunpack.i.l.bf16 %v1899_v55  ;;  %v572_v8 = vpop.permute.xlu1 %571  ;;  %v566_v29 = vpop.permute.xlu0 %565  ;;  %v683_v41 = vsel %vm3180_vm10, %v681_v31, %v630_v22  ;;  %v3201_v47 = vrot.slane %v2599_v58, 6 }
 0x207   : >> { %v727_v42 = vsel %vm3178_vm12, %v725_v14, %v709_v19  ;;  %v477_v16 = vsel %vm352_vm7, %v1895_v36, %v1901_v43  ;;  %v574_v62 = vsel %vm3175_vm4, %v2508_v51, %v572_v8  ;;  %v568_v50 = vsel %vm3175_vm4, %v2533_v13, %v566_v29 }
 0x208   : >> { %v604_v18 = vrot.slane %v477_v16, 4  ;;  %v499_v55 = vsel %vm352_vm7, %v1895_v36, %v1900_v44  ;;  %v525_v10 = vsel %vm352_vm7, %v2655_v45, %v1900_v44  ;;  %v575_v60 = vsel %vm348_vm5, %v574_v62, %v1846_v53 }
 0x209   : >> { %v649_v22 = vrot.slane %v525_v10, 4  ;;  %v3197_v19 = vrot.slane %v2584_v52, 1  ;;  %v576_v51 = vsel %vm350_vm6, %v575_v60, %v2530_v11  ;;  %v668_v13 = vsel %vm3179_vm11, %v665_v35, %v603_v32 }
 0x20a   : >> { %v724_v8 = vsel %vm3180_vm10, %v722_v15, %v525_v10  ;;  %v3198_v36 = vunpack.i.h.bf16 %v2556_v25  ;;  %v578_v40 = vpop.permute.xlu0 %577  ;;  %v669_v46 = vsel %vm3179_vm11, %v666_v63, %v604_v18  ;;  %v3199_v15 = vrot.slane %v2551_v23, 7 }
 0x20b   : >> { %v680_v39 = vsel %vm658_vm8, %v3197_v19, %v499_v55  ;;  %v580_v11 = vsel %vm3175_vm4, %v2595_v57, %v578_v40  ;;  %v672_v35 = vsel %vm3178_vm12, %v669_v46, %v610_v24  ;;  %v715_v26 = vrot.slane %v576_v51, 5 }
 0x20c   : >> { %v569_v27 = vsel %vm348_vm5, %v568_v50, %v3198_v36  ;;  %v682_v53 = vsel %vm3181_vm9, %v680_v39, %v2661_v34  ;;  %v581_v32 = vsel %vm348_vm5, %v580_v11, %v1891_v56  ;;  %v3200_v63 = vrot.slane %v2546_v20, 3 }
 0x20d   : >> { %v570_v52 = vsel %vm350_vm6, %v569_v27, %v2581_v49  ;;  %v684_v25 = vsel %vm3180_vm10, %v682_v53, %v3199_v15  ;;  %v3202_v57 = vrot.slane %v2625_v59, 2  ;;  %v3203_v21 = vrot.slane %v2588_v54, 5 }
 0x20e   : >> { %v675_v12 = vsel %vm3177_vm13, %v672_v35, %v3200_v63  ;;  %v686_v49 = vsel %vm3179_vm11, %v684_v25, %v3201_v47  ;;  %v712_v31 = vrot.slane %v570_v52, 6  ;;  %v726_v56 = vsel %vm3179_vm11, %v724_v8, %v2661_v34 }
 0x20f   : >> { %v678_v24 = vsel %vm3176_vm14, %v675_v12, %v3202_v57  ;;  %v688_v48 = vsel %vm3178_vm12, %v686_v49, %v3203_v21  ;;  %v582_v20 = vsel %vm350_vm6, %v581_v32, %v2655_v45  ;;  %v671_v14 = vsel %vm3178_vm12, %v668_v13, %v609_v37 }
 0x210   : >> { %v690_v43 = vsel %vm3177_vm13, %v688_v48, %v649_v22  ;;  %v3204_v44 = vrot.slane %v2612_v28, 6  ;;  %v3205_v16 = vrot.slane %v2525_v9, 3  ;;  %v3206_v50 = vrot.slane %v2573_v38, 5 }
 0x211   : >> { %v692_v29 = vsel %vm3176_vm14, %v690_v43, %v655_v17  ;;  %v3207_v45 = vmov %v3199_v15  ;;  %v3208_v37 = vrot.slane %v2615_v30, 2  ;;  %v3209_v17 = vmov %v3201_v47 }
 0x212   : >> { %v685_v59 = vsel %vm3179_vm11, %v683_v41, %v3204_v44  ;;  %v674_v62 = vsel %vm3177_vm13, %v671_v14, %v3205_v16  ;;  %v728_v18 = vsel %vm3178_vm12, %v726_v56, %v3207_v45  ;;  %v1619_v55 = vpack.c.bf16 %v692_v29, %v678_v24 }
 0x213   : >> { %v687_v34 = vsel %vm3178_vm12, %v685_v59, %v3206_v50  ;;  %v677_v28 = vsel %vm3176_vm14, %v674_v62, %v3208_v37  ;;  %v730_v9 = vsel %vm3177_vm13, %v728_v18, %v3209_v17  ;;  %v3210_v38 = vmov %v3203_v21 }
 0x214   : >> { %v689_v41 = vsel %vm3177_vm13, %v687_v34, %v648_v33  ;;  %v732_v60 = vsel %vm3176_vm14, %v730_v9, %v3210_v38  ;;  %v729_v23 = vsel %vm3177_vm13, %v727_v42, %v712_v31  ;;  %v718_v19 = vrot.slane %v582_v20, 4  ;;  %1620 = vmatprep.subr.bf16.mxu0 %v1619_v55  ;;  %1639 = vmatprep.subr.bf16.mxu1 %v1619_v55 }
 0x215   : >> { %v691_v10 = vsel %vm3176_vm14, %v689_v41, %v654_v61  ;;  %v731_v58 = vsel %vm3176_vm14, %v729_v23, %v715_v26  ;;  %v1623_v39 = vpack.c.bf16 %v649_v22, %v732_v60  ;;  %vm733_vm5 = vcmask 203776  }
 0x216   : >> { %v1621_v30 = vpack.c.bf16 %v691_v10, %v677_v28  ;;  %v1626_v54 = vpack.c.bf16 %v718_v19, %v731_v58  ;;  %v3213_v61 = vmov 0.0   ;;  %vm1019_vm7 = vcmask 261120  }
 0x218   : >> { %1622 = vmatpush1.bf16.msra.mxu0 %v1621_v30  ;;  %1641 = vmatpush1.bf16.msra.mxu1 %v1621_v30 }
 0x219   : >> { %1625 = vmatprep.subr.msk.bf16.mxu0 %vm2776_vm0, %v1623_v39  ;;  %1640 = vmatprep.subr.msk.bf16.mxu1 %vm2776_vm0, %v1623_v39 }
 0x21c   : >> { %1628 = vmatpush1.bf16.msk.msra.mxu0 %vm2776_vm0, %v1626_v54  ;;  %1642 = vmatpush1.bf16.msk.msra.mxu1 %vm2776_vm0, %v1626_v54 }
 0x21f   : >> { %1567 = vmatmul.mubr.msk.f32.vlgmr.msra.gmra.mrb[0].mxu0 %vm733_vm5, %v2416_v0  ;;  %1571 = vmatmul.mubr.msk.f32.vlgmr.msra.gmra.mrb[0].mxu1 %vm733_vm5, %v2436_v4 }
 0x220   : >> { %832 = vmatprep.mubr.f32.mxu0 %v3213_v61  ;;  %856 = vmatprep.mubr.f32.mxu1 %v3213_v61 }
 0x223   : >> { %1568 = vmatmul.mubr.msk.f32.gmra.mrb[2].mxu0 %vm733_vm5, %v2421_v1  ;;  %1572 = vmatmul.mubr.msk.f32.gmra.mrb[2].mxu1 %vm733_vm5, %v2441_v5 }
 0x224   : >> { %838 = vmatprep.mubr.f32.mxu0 %v3213_v61  ;;  %862 = vmatprep.mubr.f32.mxu1 %v3213_v61 }
 0x227   : >> { %1569 = vmatmul.mubr.msk.f32.gmra.mrb[4].mxu0 %vm733_vm5, %v2426_v2  ;;  %1573 = vmatmul.mubr.msk.f32.gmra.mrb[4].mxu1 %vm733_vm5, %v2446_v6 }
 0x228   : >> { %844 = vmatprep.mubr.f32.mxu0 %v3213_v61  ;;  %868 = vmatprep.mubr.f32.mxu1 %v3213_v61 }
 0x22b   : >> { %1570 = vmatmul.mubr.msk.f32.gmra.mrb[6].mxu0 %vm733_vm5, %v2431_v3  ;;  %1574 = vmatmul.mubr.msk.f32.gmra.mrb[6].mxu1 %vm733_vm5, %v2451_v7 }
 0x22c   : > { %1607 = vmatprep.mubr.msk.f32.mxu0 (%p302_p0), %vm733_vm5, %v2416_v0  ;;  %1613 = vmatprep.mubr.msk.f32.mxu1 (%p302_p0), %vm733_vm5, %v2436_v4 }
 0x2f2   : >> { %v828_v42 = vpop.f32.mrb[0].mxu0  ;;  %v852_v22 = vpop.f32.mrb[0].mxu1 }
 0x2f3   : >> { %v830_v51 = vpop.f32.mrb[1].mxu0  ;;  %v854_v13 = vpop.f32.mrb[1].mxu1  ;;  %v875_v53 = vmul.f32 %v828_v42, %v828_v42  ;;  %v883_v29 = vmul.f32 %v852_v22, %v852_v22 }
 0x2f4   : >> { %v876_v46 = vmul.f32 %v830_v51, %v830_v51  ;;  %v884_v44 = vmul.f32 %v854_v13, %v854_v13 }
 0x2f5   : >> { %v2813_v63 = vadd.f32 1e-06, %v875_v53  ;;  %v2840_v18 = vadd.f32 1e-06, %v883_v29 }
 0x2f6   : >> { %v834_v8 = vpop.f32.mrb[2].mxu0  ;;  %v858_v36 = vpop.f32.mrb[2].mxu1  ;;  %v2811_v32 = vadd.f32 1e-06, %v876_v46  ;;  %v2837_v50 = vadd.f32 1e-06, %v884_v44 }
 0x2f7   : >> { %v836_v27 = vpop.f32.mrb[3].mxu0  ;;  %v860_v40 = vpop.f32.mrb[3].mxu1  ;;  %v877_v26 = vmul.f32 %v834_v8, %v834_v8  ;;  %v885_v34 = vmul.f32 %v858_v36, %v858_v36  ;;  %vm909_vm6 = vcmp.eq.f32.partialorder %v2813_v63, inf  ;;  %vm911_vm15 = vcmp.eq.f32.partialorder %v2813_v63, 0.0 }
 0x2f8   : >> { %v878_v35 = vmul.f32 %v836_v27, %v836_v27  ;;  %1902 = vrsqrt.f32 %v2811_v32  ;;  %v886_v55 = vmul.f32 %v860_v40, %v860_v40  ;;  %v912_v41 = vand.u32 2147483648, %v2813_v63 }
 0x2f9   : >> { %v2821_v21 = vadd.f32 1e-06, %v877_v26  ;;  %1904 = vrsqrt.f32 %v2813_v63  ;;  %vm916_vm4 = vcmp.eq.f32.partialorder %v2811_v32, inf  ;;  %vm918_vm14 = vcmp.eq.f32.partialorder %v2811_v32, 0.0 }
 0x2fa   : >> { %v840_v52 = vpop.f32.mrb[4].mxu0  ;;  %v864_v11 = vpop.f32.mrb[4].mxu1  ;;  %v2817_v49 = vadd.f32 1e-06, %v878_v35  ;;  %v919_v9 = vand.u32 2147483648, %v2811_v32 }
 0x2fb   : >> { %v842_v15 = vpop.f32.mrb[5].mxu0  ;;  %v866_v25 = vpop.f32.mrb[5].mxu1  ;;  %v879_v48 = vmul.f32 %v840_v52, %v840_v52  ;;  %v2851_v10 = vadd.f32 1e-06, %v885_v34  ;;  %v2856_v19 = vadd.f32 1e-06, %v886_v55  ;;  %v887_v39 = vmul.f32 %v864_v11, %v864_v11 }
 0x2fc   : >> { %v880_v31 = vmul.f32 %v842_v15, %v842_v15  ;;  %1906 = vrsqrt.f32 %v2817_v49  ;;  %v888_v38 = vmul.f32 %v866_v25, %v866_v25  ;;  %vm923_vm13 = vcmp.eq.f32.partialorder %v2821_v21, inf }
 0x2fd   : >> { %1908 = vrsqrt.f32 %v2821_v21  ;;  %v2829_v43 = vadd.f32 1e-06, %v879_v48  ;;  %vm925_vm12 = vcmp.eq.f32.partialorder %v2821_v21, 0.0  ;;  %v926_v42 = vand.u32 2147483648, %v2821_v21 }
 0x2fe   : >> { %v846_v12 = vpop.f32.mrb[6].mxu0  ;;  %v2815_v47 = vpop.f32.mrb[6].mxu1  ;;  %v2826_v56 = vadd.f32 1e-06, %v880_v31  ;;  %vm930_vm11 = vcmp.eq.f32.partialorder %v2817_v49, inf  ;;  %vm932_vm10 = vcmp.eq.f32.partialorder %v2817_v49, 0.0 }
 0x2ff   : >> { %v848_v57 = vpop.f32.mrb[7].mxu0  ;;  %v2819_v24 = vpop.f32.mrb[7].mxu1  ;;  %v881_v14 = vmul.f32 %v846_v12, %v846_v12  ;;  %v933_v22 = vand.u32 2147483648, %v2817_v49  ;;  %vm937_vm9 = vcmp.eq.f32.partialorder %v2829_v43, inf  ;;  %v2870_v51 = vadd.f32 1e-06, %v888_v38 }
 0x300   : >> { %v882_v20 = vmul.f32 %v848_v57, %v848_v57  ;;  %1910 = vrsqrt.f32 %v2826_v56  ;;  %v890_v52 = vmul.f32 %v2819_v24, %v2819_v24  ;;  %v940_v35 = vand.u32 2147483648, %v2829_v43 }
 0x301   : >> { %1912 = vrsqrt.f32 %v2829_v43  ;;  %v2835_v16 = vadd.f32 1e-06, %v881_v14  ;;  %v2889_v15 = vadd.f32 1e-06, %v887_v39  ;;  %v889_v25 = vmul.f32 %v2815_v47, %v2815_v47 }
 0x302   : >> { %v2832_v59 = vadd.f32 1e-06, %v882_v20  ;;  %v1903_v62 = vpop.eup %1902  ;;  %v947_v12 = vand.u32 2147483648, %v2826_v56  ;;  %v2908_v20 = vadd.f32 1e-06, %v890_v52 }
 0x303   : >> { %v1905_v45 = vpop.eup %1904  ;;  %v915_v17 = vmul.f32 %v1903_v62, %v2811_v32 }
 0x304   : >> { %1914 = vrsqrt.f32 %v2832_v59  ;;  %v908_v60 = vmul.f32 %v1905_v45, %v2813_v63 }
 0x305   : >> { %1916 = vrsqrt.f32 %v2835_v16  ;;  %v917_v61 = vsel %vm916_vm4, %v2811_v32, %v915_v17  ;;  %vm972_vm4 = vcmp.eq.f32.partialorder %v2837_v50, inf }
 0x306   : >> { %v1907_v37 = vpop.eup %1906  ;;  %1918 = vrsqrt.f32 %v2837_v50  ;;  %v910_v13 = vsel %vm909_vm6, %v2813_v63, %v908_v60  ;;  %v920_v40 = vsel %vm918_vm14, %v919_v9, %v917_v61  ;;  %v954_v9 = vand.u32 2147483648, %v2835_v16 }
 0x307   : >> { %v1909_v28 = vpop.eup %1908  ;;  %1920 = vrsqrt.f32 %v2840_v18  ;;  %v929_v23 = vmul.f32 %v1907_v37, %v2817_v49  ;;  %v913_v26 = vsel %vm911_vm15, %v912_v41, %v910_v13  ;;  %v1020_v48 = vsel %vm1019_vm7, %v920_v40, 0.0 }
 0x308   : >> { %v922_v58 = vmul.f32 %v1909_v28, %v2821_v21  ;;  %1922 = vrsqrt.f32 %v2851_v10  ;;  %v1021_v14 = vadd.f32 %v1020_v48, %v913_v26  ;;  %v961_v41 = vand.u32 2147483648, %v2832_v59 }
 0x309   : >> { %v931_v8 = vsel %vm930_vm11, %v2817_v49, %v929_v23  ;;  %1924 = vrsqrt.f32 %v2856_v19  ;;  %vm944_vm11 = vcmp.eq.f32.partialorder %v2826_v56, inf  ;;  %vm960_vm14 = vcmp.eq.f32.partialorder %v2832_v59, 0.0 }
 0x30a   : >> { %v1911_v30 = vpop.eup %1910  ;;  %v924_v46 = vsel %vm923_vm13, %v2821_v21, %v922_v58  ;;  %v934_v32 = vsel %vm932_vm10, %v933_v22, %v931_v8  ;;  %1926 = vrsqrt.f32 %v2870_v51  ;;  %vm946_vm10 = vcmp.eq.f32.partialorder %v2826_v56, 0.0 }
 0x30b   : >> { %v1913_v54 = vpop.eup %1912  ;;  %v943_v36 = vmul.f32 %v1911_v30, %v2826_v56  ;;  %v927_v31 = vsel %vm925_vm12, %v926_v42, %v924_v46  ;;  %1928 = vrsqrt.f32 %v2889_v15  ;;  %v2912_v21 = vadd.f32 1e-06, %v889_v25 }
 0x30c   : >> { %v936_v53 = vmul.f32 %v1913_v54, %v2829_v43  ;;  %v1023_v29 = vsel %vm1019_vm7, %v934_v32, 0.0  ;;  %vm939_vm12 = vcmp.eq.f32.partialorder %v2829_v43, 0.0  ;;  %vm958_vm13 = vcmp.eq.f32.partialorder %v2832_v59, inf }
 0x30d   : >> { %v945_v57 = vsel %vm944_vm11, %v2826_v56, %v943_v36  ;;  %v1022_v34 = vadd.f32 %v1021_v14, %v927_v31  ;;  %1930 = vrsqrt.f32 %v2908_v20  ;;  %vm953_vm6 = vcmp.eq.f32.partialorder %v2835_v16, 0.0 }
 0x30e   : >> { %v1915_v27 = vpop.eup %1914  ;;  %v938_v63 = vsel %vm937_vm9, %v2829_v43, %v936_v53  ;;  %v948_v62 = vsel %vm946_vm10, %v947_v12, %v945_v57  ;;  %vm951_vm9 = vcmp.eq.f32.partialorder %v2835_v16, inf  ;;  %1932 = vrsqrt.f32 %v2912_v21 }
 0x30f   : >> { %v1917_v11 = vpop.eup %1916  ;;  %v957_v24 = vmul.f32 %v1915_v27, %v2832_v59  ;;  %v941_v55 = vsel %vm939_vm12, %v940_v35, %v938_v63  ;;  %v1024_v17 = vadd.f32 %v1023_v29, %v1022_v34  ;;  %v1026_v38 = vsel %vm1019_vm7, %v948_v62, 0.0 }
 0x310   : >> { %v1919_v47 = vpop.eup %1918  ;;  %v950_v49 = vmul.f32 %v1917_v11, %v2835_v16  ;;  %vm965_vm15 = vcmp.eq.f32.partialorder %v2840_v18, inf  ;;  %v975_v58 = vand.u32 2147483648, %v2837_v50  ;;  %vm974_vm11 = vcmp.eq.f32.partialorder %v2837_v50, 0.0 }
 0x311   : >> { %v1921_v44 = vpop.eup %1920  ;;  %v971_v45 = vmul.f32 %v1919_v47, %v2837_v50  ;;  %v959_v37 = vsel %vm958_vm13, %v2832_v59, %v957_v24  ;;  %v1025_v30 = vadd.f32 %v1024_v17, %v941_v55  ;;  %v968_v22 = vand.u32 2147483648, %v2840_v18 }
 0x312   : >> { %v1923_v56 = vpop.eup %1922  ;;  %v952_v28 = vsel %vm951_vm9, %v2835_v16, %v950_v49  ;;  %v964_v60 = vmul.f32 %v1921_v44, %v2840_v18  ;;  %v962_v23 = vsel %vm960_vm14, %v961_v41, %v959_v37  ;;  %vm979_vm10 = vcmp.eq.f32.partialorder %v2851_v10, inf }
 0x313   : >> { %v1925_v43 = vpop.eup %1924  ;;  %v955_v39 = vsel %vm953_vm6, %v954_v9, %v952_v28  ;;  %v978_v61 = vmul.f32 %v1923_v56, %v2851_v10  ;;  %v973_v59 = vsel %vm972_vm4, %v2837_v50, %v971_v45  ;;  %v1027_v42 = vadd.f32 %v1026_v38, %v1025_v30 }
 0x314   : >> { %v1927_v54 = vpop.eup %1926  ;;  %v985_v16 = vmul.f32 %v1925_v43, %v2856_v19  ;;  %v1029_v13 = vsel %vm1019_vm7, %v962_v23, 0.0  ;;  %v966_v8 = vsel %vm965_vm15, %v2840_v18, %v964_v60  ;;  %vm967_vm12 = vcmp.eq.f32.partialorder %v2840_v18, 0.0 }
 0x315   : >> { %vm986_vm13 = vcmp.eq.f32.partialorder %v2856_v19, inf  ;;  %v1028_v36 = vadd.f32 %v1027_v42, %v955_v39  ;;  %v1929_v27 = vpop.eup %1928  ;;  %v976_v40 = vsel %vm974_vm11, %v975_v58, %v973_v59  ;;  %v982_v50 = vand.u32 2147483648, %v2851_v10 }
 0x316   : >> { %v980_v46 = vsel %vm979_vm10, %v2851_v10, %v978_v61  ;;  %vm981_vm4 = vcmp.eq.f32.partialorder %v2851_v10, 0.0  ;;  %v989_v53 = vand.u32 2147483648, %v2856_v19  ;;  %v969_v11 = vsel %vm967_vm12, %v968_v22, %v966_v8 }
 0x317   : >> { %v1030_v52 = vadd.f32 %v1029_v13, %v1028_v36  ;;  %v987_v35 = vsel %vm986_vm13, %v2856_v19, %v985_v16  ;;  %vm988_vm9 = vcmp.eq.f32.partialorder %v2856_v19, 0.0  ;;  %v999_v18 = vmul.f32 %v1927_v54, %v2870_v51  ;;  %v1931_v25 = vpop.eup %1930 }
 0x318   : >> { %v992_v26 = vmul.f32 %v1929_v27, %v2889_v15  ;;  %vm1000_vm14 = vcmp.eq.f32.partialorder %v2870_v51, inf  ;;  %v1933_v12 = vpop.eup %1932  ;;  %v983_v31 = vsel %vm981_vm4, %v982_v50, %v980_v46  ;;  %vm993_vm6 = vcmp.eq.f32.partialorder %v2889_v15, inf }
 0x319   : >> { %v1031_v32 = vadd.f32 %v1030_v52, %v969_v11  ;;  %v1032_v10 = vsel %vm1019_vm7, %v976_v40, 0.0  ;;  %v990_v57 = vsel %vm988_vm9, %v989_v53, %v987_v35  ;;  %vm995_vm15 = vcmp.eq.f32.partialorder %v2889_v15, 0.0 }
 0x31a   : >> { %v1003_v24 = vand.u32 2147483648, %v2870_v51  ;;  %v996_v48 = vand.u32 2147483648, %v2889_v15  ;;  %v1001_v47 = vsel %vm1000_vm14, %v2870_v51, %v999_v18  ;;  %vm1002_vm11 = vcmp.eq.f32.partialorder %v2870_v51, 0.0 }
 0x31b   : >> { %v1033_v19 = vadd.f32 %v1032_v10, %v1031_v32  ;;  %v1013_v63 = vmul.f32 %v1931_v25, %v2908_v20  ;;  %v994_v49 = vsel %vm993_vm6, %v2889_v15, %v992_v26  ;;  %v1006_v14 = vmul.f32 %v1933_v12, %v2912_v21 }
 0x31c   : >> { %vm1014_vm10 = vcmp.eq.f32.partialorder %v2908_v20, inf  ;;  %vm1007_vm12 = vcmp.eq.f32.partialorder %v2912_v21, inf  ;;  %v1035_v29 = vsel %vm1019_vm7, %v990_v57, 0.0  ;;  %v1004_v62 = vsel %vm1002_vm11, %v1003_v24, %v1001_v47 }
 0x31d   : >> { %v1034_v44 = vadd.f32 %v1033_v19, %v983_v31  ;;  %v1017_v34 = vand.u32 2147483648, %v2908_v20  ;;  %v997_v51 = vsel %vm995_vm15, %v996_v48, %v994_v49  ;;  %v1010_v55 = vand.u32 2147483648, %v2912_v21 }
 0x31e   : >> { %v1015_v37 = vsel %vm1014_vm10, %v2908_v20, %v1013_v63  ;;  %vm1016_vm13 = vcmp.eq.f32.partialorder %v2908_v20, 0.0  ;;  %v1008_v56 = vsel %vm1007_vm12, %v2912_v21, %v1006_v14  ;;  %vm1009_vm4 = vcmp.eq.f32.partialorder %v2912_v21, 0.0  ;;  %v2984_v21 = vld [vmem:[#allocation2 + $0x10] sm:$0xff] (%p302_p0) }
 0x31f   : >> { %v1036_v45 = vadd.f32 %v1035_v29, %v1034_v44  ;;  %v1038_v41 = vsel %vm1019_vm7, %v1004_v62, 0.0  ;;  %v1018_v17 = vsel %vm1016_vm13, %v1017_v34, %v1015_v37  ;;  %v1011_v9 = vsel %vm1009_vm4, %v1010_v55, %v1008_v56  ;;  %1073 = vrot.lane.b32.xlu0 (%p302_p0), %v2984_v21, %s2176_s26  ;;  %s2190_s26 = smov (%p302_p0), 40  }
 0x320   : >> { %v1041_v15 = vsel %vm1019_vm7, %v1018_v17, 0.0  ;;  %v1055_v59 = vrot.slane (%p302_p0), %v2984_v21, 1  ;;  %v1059_v42 = vrot.slane (%p302_p0), %v2984_v21, 2  ;;  %v1063_v0 = vrot.slane (%p302_p0), %v2984_v21, 3 }
 0x321   : >> { %v1037_v28 = vadd.f32 %v1036_v45, %v997_v51  ;;  %vm3216_vm7 = vcmask (%p302_p0), 1041408   ;;  %vm3218_vm14 = vcmask (%p302_p0), 1042432   ;;  %vm3224_vm10 = vcmask (%p302_p0), 1044480  }
 0x322   : > { %vm3217_vm9 = vmmov (%p302_p0), %vm3216_vm7 }
 0x323   : >> { %v1039_v43 = vadd.f32 %v1038_v41, %v1037_v28  ;;  %1076 = vrot.lane.b32.xlu0 (%p302_p0), %v1055_v59, %s2178_s25  ;;  %s2192_s25 = smov (%p302_p0), 36   ;;  %vm3219_vm6 = vmmov (%p302_p0), %vm3218_vm14 }
 0x324   : > { %vm3220_vm15 = vmmov (%p302_p0), %vm3216_vm7 }
 0x325   : >> { %v1040_v38 = vadd.f32 %v1039_v43, %v1011_v9  ;;  %vm3225_vm12 = vmmov (%p302_p0), %vm3224_vm10 }
 0x326   : > { %vm3229_vm4 = vmmov (%p302_p0), %vm3224_vm10 }
 0x327   : >> { %v1042_v60 = vadd.f32 %v1041_v15, %v1040_v38  ;;  %1079 = vrot.lane.b32.xlu0 (%p302_p0), %v1059_v42, %s2180_s22 }
 0x329   : >> { %1043 = vadd.xlane.f32.xlu1 %v1042_v60 }
 0x32b   : > { %1091 = vrot.lane.b32.xlu0 (%p302_p0), %v1055_v59, %s2182_s11 }
 0x32f   : > { %1056 = vrot.lane.b32.xlu0 (%p302_p0), %v1055_v59, %s2184_s23  ;;  %s1418_s23 = smul.f32 (%p302_p0), 0.00086805556, %s2453_s9 }
 0x333   : > { %1094 = vrot.lane.b32.xlu0 (%p302_p0), %v1059_v42, %s2186_s21 }
 0x33a   : > { %1103 = vrot.lane.b32.xlu1 (%p302_p0), %v2984_v21, %s2175_s20  ;;  %s2189_s20 = smov (%p302_p0), 58  }
 0x33e   : > { %1106 = vrot.lane.b32.xlu1 (%p302_p0), %v1055_v59, %s2177_s8  ;;  %s2191_s8 = smov (%p302_p0), 60  }
 0x391   : > { %v1074_v22 = vpop.permute.xlu0 (%p302_p0), %1073 }
 0x395   : > { %v1077_v13 = vpop.permute.xlu0 (%p302_p0), %1076 }
 0x396   : > { %v1085_v18 = vsel (%p302_p0), %vm340_vm1, %v1074_v22, %v1077_v13 }
 0x399   : > { %v1080_v36 = vpop.permute.xlu0 (%p302_p0), %1079 }
 0x39a   : > { %v1086_v26 = vsel (%p302_p0), %vm342_vm2, %v1085_v18, %v1080_v36 }
 0x39d   : > { %v1092_v40 = vpop.permute.xlu0 (%p302_p0), %1091 }
 0x3a1   : > { %v1057_v46 = vpop.permute.xlu0 (%p302_p0), %1056 }
 0x3a2   : > { %v1068_v47 = vsel (%p302_p0), %vm340_vm1, %v2984_v21, %v1057_v46 }
 0x3a5   : > { %v1095_v52 = vpop.permute.xlu0 (%p302_p0), %1094 }
 0x3b6   : >> { %v1044_v23 = vpop.xlane.xlu1 %1043 }
 0x3b7   : >> { %v1045_v30 = vrot.slane %v1044_v23, 4 }
 0x3b9   : >> { %v1046_v58 = vadd.f32 %v1045_v30, %v1044_v23 }
 0x3ba   : > { %v1104_v4 = vpop.permute.xlu1 (%p302_p0), %1103 }
 0x3bb   : >> { %v1047_v20 = vrot.slane %v1046_v58, 2 }
 0x3bd   : >> { %v1048_v39 = vadd.f32 %v1047_v20, %v1046_v58 }
 0x3be   : > { %v1107_v16 = vpop.permute.xlu1 (%p302_p0), %1106 }
 0x3bf   : >> { %v1049_v54 = vrot.slane %v1048_v39, 1  ;;  %v1115_v24 = vsel (%p302_p0), %vm340_vm1, %v1104_v4, %v1107_v16 }
 0x3c1   : >> { %v1050_v61 = vadd.f32 %v1049_v54, %v1048_v39 }
 0x3c3   : >> { %1656 = vpush %v1050_v61 }
 0x3f2   : > { %304 = sbr.rel (!%p302_p0) target bundleno = 321 (0x141), region = 98 }
 0x3f4   : >> { %s1657_s5 = spop %1656 }
 0x3f5   : >> { %s2976_s24 = sadd.f32 %s2124_s24, %s1657_s5   ;;  %s2188_s5 = smov (%p302_p0), 124  }
 0x3f6   : > { %1118 = vrot.lane.b32.xlu0 (%p302_p0), %v2984_v21, %s2188_s5 }
 0x3f7   : >> { %s3214_s10 = smov %s2976_s24 }
 0x3f8   : >> { %s3215_s24 = smov %s3214_s10 }
 0x3f9   : > { %s2179_s24 = smov 126  }
 0x3fa   : > { %1088 = vrot.lane.b32.xlu1 %v2984_v21, %s2179_s24  ;;  %1060 = vrot.lane.b32.xlu0 %v1059_v42, %s2190_s26  ;;  %s2193_s24 = smov 56  }
 0x3fb   : > { %s1414_s22 = scalar_select %p1413_p2, 0.58661, 0.11448 }
 0x3fd   : > { %s3262_s22 = smov (%p1412_p4, %s1414_s22), 0.29891 }
 0x3fe   : > { %1109 = vrot.lane.b32.xlu1 %v1059_v42, %s2181_s7  ;;  %1124 = vrot.lane.b32.xlu0 %v1059_v42, %s2192_s25  ;;  %s1660_s7 = smul.u32 3, %s2108_s16 }
 0x402   : > { %1082 = vrot.lane.b32.xlu1 %v1063_v0, %s2183_s0  ;;  %1127 = vrot.lane.b32.xlu0 %v1063_v0, %s2193_s24 }
 0x406   : > { %1112 = vrot.lane.b32.xlu1 %v1063_v0, %s2185_s27  ;;  %s1435_s27 = sadd.s32 %s2104_s15, %s1660_s7  ;;  %s1425_s15 = scalar_lea.sflag [#allocation5], %s2400_s29 }
 0x407   : > { %s1584_s26 = sshll.u32 %s1435_s27, 4 }
 0x408   : > { %s3106_s1 = scalar_lea.hbm %s3165_s3, %s1584_s26 }
 0x40a   : > { %1121 = vrot.lane.b32.xlu1 %v1055_v59, %s2187_s30  ;;  %s3242_s30 = scalar_lea.vmem [#allocation8], %s2400_s29 }
 0x40b   : > { %s1439_s5 = sshll.u32 %s3242_s30, 4  ;;  %s3243_s16 = smov %s3242_s30  ;;  %s3108_s5 = int_to_ptr.vmem [resolvable:$true] %s1439_s5 }
 0x40c   : > { %s2010_s9 = scalar_lea.vmem %s3108_s5, 16 }
 0x40d   : > { %p2011_p13 = scmp.ne.s32.totalorder %s3108_s5, %s2010_s9 }
 0x40e   : > { %1097 = vrot.lane.b32.xlu1 %v1063_v0, %s2189_s20 }
 0x40f   : > { %p2012_p7 = pnand %p2011_p13, %p3244_p6 }
 0x411   : > { %p2013_p9 = pneg %p2012_p7 }
 0x412   : > { %1064 = vrot.lane.b32.xlu1 %v1063_v0, %s2191_s8 }
 0x468   : > { %v1119_v35 = vpop.permute.xlu0 %1118 }
 0x46c   : > { %v1089_v8 = vpop.permute.xlu1 %1088  ;;  %v1061_v31 = vpop.permute.xlu0 %1060 }
 0x46d   : > { %v1100_v25 = vsel %vm340_vm1, %v1089_v8, %v1092_v40  ;;  %v1070_v44 = vsel %vm342_vm2, %v1068_v47, %v1061_v31 }
 0x46e   : > { %v1101_v32 = vsel %vm342_vm2, %v1100_v25, %v1095_v52 }
 0x470   : > { %v1110_v27 = vpop.permute.xlu1 %1109  ;;  %v1125_v62 = vpop.permute.xlu0 %1124 }
 0x471   : > { %v1116_v48 = vsel %vm342_vm2, %v1115_v24, %v1110_v27 }
 0x474   : > { %v1083_v50 = vpop.permute.xlu1 %1082  ;;  %v1128_v17 = vpop.permute.xlu0 %1127 }
 0x475   : > { %v1087_v10 = vsel %vm344_vm3, %v1086_v26, %v1083_v50 }
 0x476   : > { %v1134_v63 = vrot.slane %v1087_v10, 7  ;;  %v1148_v49 = vrot.slane %v1087_v10, 3 }
 0x478   : > { %v1113_v53 = vpop.permute.xlu1 %1112 }
 0x479   : > { %v1117_v14 = vsel %vm344_vm3, %v1116_v48, %v1113_v53 }
 0x47a   : > { %v1152_v37 = vrot.slane %v1117_v14, 1  ;;  %v1140_v43 = vrot.slane %v1117_v14, 5 }
 0x47c   : > { %v1122_v11 = vpop.permute.xlu1 %1121 }
 0x47d   : > { %v1130_v56 = vsel %vm340_vm1, %v1119_v35, %v1122_v11  ;;  %vm3221_vm1 = vcmask 1043456  }
 0x47e   : > { %v1131_v41 = vsel %vm342_vm2, %v1130_v56, %v1125_v62  ;;  %vm3222_vm11 = vmmov %vm3221_vm1 }
 0x47f   : > { %v1132_v38 = vsel %vm344_vm3, %v1131_v41, %v1128_v17  ;;  %vm3223_vm2 = vmmov %vm3219_vm6 }
 0x480   : > { %v1098_v12 = vpop.permute.xlu1 %1097  ;;  %v1143_v15 = vrot.slane %v1132_v38, 4  ;;  %v1168_v60 = vsel %vm658_vm8, %v1152_v37, %v1132_v38 }
 0x481   : > { %v1102_v57 = vsel %vm344_vm3, %v1101_v32, %v1098_v12 }
 0x482   : > { %v1150_v19 = vrot.slane %v1102_v57, 2  ;;  %v1137_v45 = vrot.slane %v1102_v57, 6 }
 0x484   : > { %v1065_v29 = vpop.permute.xlu1 %1064  ;;  %v1175_v51 = vsel %vm658_vm8, %v1148_v49, %v1150_v19 }
 0x485   : > { %v1072_v34 = vsel %vm344_vm3, %v1070_v44, %v1065_v29  ;;  %v1176_v9 = vsel %vm3217_vm9, %v1175_v51, %v1152_v37  ;;  %vm3226_vm3 = vmmov %vm3221_vm1  ;;  %vm3231_vm9 = vcmask 1046528  }
 0x486   : > { %v1155_v55 = vsel %vm658_vm8, %v1072_v34, %v1134_v63  ;;  %v1177_v23 = vsel %vm3218_vm14, %v1176_v9, %v1132_v38  ;;  %v1146_v30 = vrot.slane %v1072_v34, 4  ;;  %v1169_v20 = vsel %vm3220_vm15, %v1168_v60, %v1072_v34  ;;  %vm3232_vm14 = vmmov %vm3231_vm9 }
 0x487   : > { %v1157_v28 = vsel %vm3216_vm7, %v1155_v55, %v1137_v45  ;;  %v1178_v39 = vsel %vm3221_vm1, %v1177_v23, %v1072_v34  ;;  %v1170_v61 = vsel %vm3223_vm2, %v1169_v20, %v1134_v63  ;;  %vm3227_vm8 = vcmask 1045504  }
 0x488   : > { %v1159_v58 = vsel %vm3219_vm6, %v1157_v28, %v1140_v43  ;;  %v1179_v21 = vsel %vm3224_vm10, %v1178_v39, %v1134_v63  ;;  %v1171_v42 = vsel %vm3226_vm3, %v1170_v61, %v1137_v45  ;;  %vm3228_vm13 = vmmov %vm3227_vm8 }
 0x489   : > { %v1161_v54 = vsel %vm3222_vm11, %v1159_v58, %v1143_v15  ;;  %v1180_v0 = vsel %vm3227_vm8, %v1179_v21, %v1137_v45  ;;  %v1172_v22 = vsel %vm3229_vm4, %v1171_v42, %v1140_v43  ;;  %vm3230_vm7 = vmmov %vm3227_vm8  ;;  %vm3234_vm11 = vcmask 654336  }
 0x48a   : > { %v1163_v59 = vsel %vm3225_vm12, %v1161_v54, %v1146_v30  ;;  %v1173_v16 = vsel %vm3230_vm7, %v1172_v22, %v1143_v15  ;;  %vm3233_vm6 = vmmov %vm3231_vm9 }
 0x48b   : > { %v1165_v4 = vsel %vm3228_vm13, %v1163_v59, %v1148_v49  ;;  %v1174_v8 = vsel %vm3232_vm14, %v1173_v16, %v1146_v30  ;;  %v1181_v36 = vsel %vm3233_vm6, %v1180_v0, %v1140_v43  ;;  %vm3235_vm12 = vmmov %vm3234_vm11 }
 0x48c   : > { %v1167_v13 = vsel %vm3231_vm9, %v1165_v4, %v1150_v19  ;;  %v1633_v40 = vpack.c.bf16 %v1143_v15, %v1181_v36  ;;  %vm3236_vm9 = vmmov %vm3234_vm11 }
 0x48d   : > { %v1629_v27 = vpack.c.bf16 %v1174_v8, %v1167_v13 }
 0x48f   : > { %1630 = vmatprep.subr.bf16.mxu0 %v1629_v27  ;;  %1643 = vmatprep.subr.bf16.mxu1 %v1629_v27 }
 0x490   : > { %1632 = vmatpush3.bf16.msra.mxu0 %v1629_v27  ;;  %1645 = vmatpush3.bf16.msra.mxu1 %v1629_v27 }
 0x491   : > { %1635 = vmatprep.subr.msk.bf16.mxu0 %vm2776_vm0, %v1633_v40  ;;  %1644 = vmatprep.subr.msk.bf16.mxu1 %vm2776_vm0, %v1633_v40 }
 0x494   : > { %1638 = vmatpush3.bf16.msk.msra.mxu0 %vm2776_vm0, %v1633_v40  ;;  %1646 = vmatpush3.bf16.msk.msra.mxu1 %vm2776_vm0, %v1633_v40 }
 0x497   : > { %1608 = vmatmul.mubr.msk.f32.vlgmr.msra.gmra.mrb[0].mxu0 %vm733_vm5, %v2421_v1  ;;  %1614 = vmatmul.mubr.msk.f32.vlgmr.msra.gmra.mrb[0].mxu1 %vm733_vm5, %v2441_v5 }
 0x498   : > { %1610 = vmatprep.mubr.msk.f32.mxu0 %vm733_vm5, %v2426_v2  ;;  %1616 = vmatprep.mubr.msk.f32.mxu1 %vm733_vm5, %v2446_v6 }
 0x49b   : > { %1611 = vmatmul.mubr.msk.f32.gmra.mrb[2].mxu0 %vm733_vm5, %v2431_v3  ;;  %1617 = vmatmul.mubr.msk.f32.gmra.mrb[2].mxu1 %vm733_vm5, %v2451_v7 }
 0x56a   : > { %v1609_v33 = vpop.f32.mrb[0].mxu0  ;;  %v1615_v50 = vpop.f32.mrb[0].mxu1 }
 0x56b   : > { %v1315_v46 = vmul.f32 %v1609_v33, %v1609_v33  ;;  %v1319_v53 = vmul.f32 %v1615_v50, %v1615_v50  ;;  %v1275_v1 = vpop.f32.mrb[1].mxu0  ;;  %v1295_v52 = vpop.f32.mrb[1].mxu1 }
 0x56c   : > { %v1314_v11 = vmul.f32 %v1275_v1, %v1275_v1  ;;  %v1318_v5 = vmul.f32 %v1295_v52, %v1295_v52 }
 0x56d   : > { %v1323_v35 = vadd.f32 1e-06, %v1315_v46  ;;  %v3054_v18 = vadd.f32 1e-06, %v1319_v53 }
 0x56e   : > { %v1322_v2 = vadd.f32 1e-06, %v1314_v11  ;;  %v3056_v25 = vadd.f32 1e-06, %v1318_v5  ;;  %v1612_v6 = vpop.f32.mrb[2].mxu0  ;;  %v1618_v26 = vpop.f32.mrb[2].mxu1 }
 0x56f   : > { %1934 = vrsqrt.f32 %v1323_v35  ;;  %v1317_v3 = vmul.f32 %v1612_v6, %v1612_v6  ;;  %v1285_v32 = vpop.f32.mrb[3].mxu0  ;;  %v1305_v7 = vpop.f32.mrb[3].mxu1  ;;  %v1321_v12 = vmul.f32 %v1618_v26, %v1618_v26  ;;  %vm1339_vm0 = vcmp.eq.f32.partialorder %v1323_v35, inf }
 0x570   : > { %1936 = vrsqrt.f32 %v3054_v18  ;;  %v1316_v10 = vmul.f32 %v1285_v32, %v1285_v32  ;;  %v1320_v57 = vmul.f32 %v1305_v7, %v1305_v7  ;;  %v1342_v44 = vand.u32 2147483648, %v1323_v35 }
 0x571   : > { %1938 = vrsqrt.f32 %v1322_v2  ;;  %v1325_v31 = vadd.f32 1e-06, %v1317_v3  ;;  %v3060_v24 = vadd.f32 1e-06, %v1321_v12  ;;  %vm1341_vm5 = vcmp.eq.f32.partialorder %v1323_v35, 0.0 }
 0x572   : > { %1940 = vrsqrt.f32 %v3056_v25  ;;  %v1324_v19 = vadd.f32 1e-06, %v1316_v10  ;;  %v3062_v48 = vadd.f32 1e-06, %v1320_v57  ;;  %vm1332_vm15 = vcmp.eq.f32.partialorder %v1322_v2, inf }
 0x573   : > { %1942 = vrsqrt.f32 %v1325_v31  ;;  %v1335_v51 = vand.u32 2147483648, %v1322_v2  ;;  %vm1334_vm1 = vcmp.eq.f32.partialorder %v1322_v2, 0.0  ;;  %vm1353_vm2 = vcmp.eq.f32.partialorder %v1325_v31, inf }
 0x574   : > { %1944 = vrsqrt.f32 %v1324_v19  ;;  %vm1355_vm10 = vcmp.eq.f32.partialorder %v1325_v31, 0.0  ;;  %v1356_v9 = vand.u32 2147483648, %v1325_v31  ;;  %vm1346_vm3 = vcmp.eq.f32.partialorder %v1324_v19, inf }
 0x575   : > { %1946 = vrsqrt.f32 %v3062_v48  ;;  %v1349_v20 = vand.u32 2147483648, %v1324_v19  ;;  %vm1360_vm8 = vcmp.eq.f32.partialorder %v3056_v25, inf  ;;  %vm1348_vm13 = vcmp.eq.f32.partialorder %v1324_v19, 0.0 }
 0x576   : > { %1948 = vrsqrt.f32 %v3060_v24  ;;  %v1363_v0 = vand.u32 2147483648, %v3056_v25  ;;  %vm1367_vm4 = vcmp.eq.f32.partialorder %v3054_v18, inf  ;;  %vm1362_vm7 = vcmp.eq.f32.partialorder %v3056_v25, 0.0 }
 0x577   : > { %v1370_v8 = vand.u32 2147483648, %v3054_v18  ;;  %vm1374_vm14 = vcmp.eq.f32.partialorder %v3062_v48, inf  ;;  %vm1369_vm6 = vcmp.eq.f32.partialorder %v3054_v18, 0.0  ;;  %v1377_v50 = vand.u32 2147483648, %v3062_v48 }
 0x578   : > { %v1384_v11 = vand.u32 2147483648, %v3060_v24 }
 0x579   : > { %v1935_v47 = vpop.eup %1934 }
 0x57a   : > { %v1937_v63 = vpop.eup %1936  ;;  %v1338_v49 = vmul.f32 %v1935_v47, %v1323_v35 }
 0x57b   : > { %v1939_v14 = vpop.eup %1938  ;;  %v1366_v23 = vmul.f32 %v1937_v63, %v3054_v18 }
 0x57c   : > { %v1941_v29 = vpop.eup %1940  ;;  %v1331_v62 = vmul.f32 %v1939_v14, %v1322_v2  ;;  %v1340_v34 = vsel %vm1339_vm0, %v1323_v35, %v1338_v49  ;;  %vm3237_vm0 = vmmov %vm3236_vm9 }
 0x57d   : > { %v1943_v45 = vpop.eup %1942  ;;  %v1343_v55 = vsel %vm1341_vm5, %v1342_v44, %v1340_v34  ;;  %v1359_v28 = vmul.f32 %v1941_v29, %v3056_v25  ;;  %v1368_v4 = vsel %vm1367_vm4, %v3054_v18, %v1366_v23  ;;  %vm1381_vm5 = vcmp.eq.f32.partialorder %v3060_v24, inf }
 0x57e   : > { %v1333_v37 = vsel %vm1332_vm15, %v1322_v2, %v1331_v62  ;;  %v1352_v56 = vmul.f32 %v1943_v45, %v1325_v31  ;;  %v1388_v41 = vsel %vm3234_vm11, %v1343_v55, 0.0  ;;  %v1945_v17 = vpop.eup %1944  ;;  %v1371_v33 = vsel %vm1369_vm6, %v1370_v8, %v1368_v4 }
 0x57f   : > { %v1336_v43 = vsel %vm1334_vm1, %v1335_v51, %v1333_v37  ;;  %v1947_v38 = vpop.eup %1946  ;;  %v1345_v15 = vmul.f32 %v1945_v17, %v1324_v19  ;;  %v1361_v61 = vsel %vm1360_vm8, %v3056_v25, %v1359_v28  ;;  %vm1376_vm15 = vcmp.eq.f32.partialorder %v3062_v48, 0.0  ;;  %vm3238_vm1 = vmmov %vm3237_vm0 }
 0x580   : > { %v1354_v60 = vsel %vm1353_vm2, %v1325_v31, %v1352_v56  ;;  %v1387_v30 = vsel %vm3235_vm12, %v1336_v43, 0.0  ;;  %v1949_v58 = vpop.eup %1948  ;;  %v1373_v21 = vmul.f32 %v1947_v38, %v3062_v48  ;;  %v1364_v13 = vsel %vm1362_vm7, %v1363_v0, %v1361_v61  ;;  %vm3239_vm2 = vmmov %vm3237_vm0 }
 0x581   : > { %v1389_v39 = vadd.f32 %v1388_v41, %v1387_v30  ;;  %v1347_v54 = vsel %vm1346_vm3, %v1324_v19, %v1345_v15  ;;  %v1357_v42 = vsel %vm1355_vm10, %v1356_v9, %v1354_v60  ;;  %v1380_v22 = vmul.f32 %v1949_v58, %v3060_v24  ;;  %vm3240_vm10 = vmmov %vm3237_vm0 }
 0x582   : > { %v1350_v59 = vsel %vm1348_vm13, %v1349_v20, %v1347_v54  ;;  %v1375_v27 = vsel %vm1374_vm14, %v3062_v48, %v1373_v21  ;;  %v1392_v40 = vsel %vm3237_vm0, %v1357_v42, 0.0  ;;  %v1394_v1 = vsel %vm3238_vm1, %v1364_v13, 0.0  ;;  %vm3241_vm12 = vmmov %vm3237_vm0 }
 0x583   : > { %v1390_v16 = vsel %vm3236_vm9, %v1350_v59, 0.0  ;;  %v1382_v53 = vsel %vm1381_vm5, %v3060_v24, %v1380_v22  ;;  %v1378_v52 = vsel %vm1376_vm15, %v1377_v50, %v1375_v27  ;;  %vm1383_vm11 = vcmp.eq.f32.partialorder %v3060_v24, 0.0 }
 0x584   : > { %v1391_v36 = vadd.f32 %v1390_v16, %v1389_v39  ;;  %v1396_v35 = vsel %vm3239_vm2, %v1371_v33, 0.0  ;;  %v1385_v18 = vsel %vm1383_vm11, %v1384_v11, %v1382_v53  ;;  %v1398_v25 = vsel %vm3240_vm10, %v1378_v52, 0.0 }
 0x585   : > { %v1400_v26 = vsel %vm3241_vm12, %v1385_v18, 0.0 }
 0x586   : > { %v1393_v46 = vadd.f32 %v1392_v40, %v1391_v36 }
 0x588   : > { %v1395_v5 = vadd.f32 %v1394_v1, %v1393_v46 }
 0x58a   : > { %v1397_v2 = vadd.f32 %v1396_v35, %v1395_v5 }
 0x58c   : > { %v1399_v6 = vadd.f32 %v1398_v25, %v1397_v2 }
 0x58e   : > { %v1401_v3 = vadd.f32 %v1400_v26, %v1399_v6 }
 0x590   : > { %1402 = vadd.xlane.f32.xlu1 %v1401_v3 }
 0x61d   : > { %v1403_v32 = vpop.xlane.xlu1 %1402 }
 0x61e   : > { %v1404_v7 = vrot.slane %v1403_v32, 4 }
 0x620   : > { %v1405_v12 = vadd.f32 %v1404_v7, %v1403_v32 }
 0x622   : > { %v1406_v31 = vrot.slane %v1405_v12, 2 }
 0x624   : > { %v1407_v10 = vadd.f32 %v1406_v31, %v1405_v12 }
 0x626   : > { %v1408_v57 = vrot.slane %v1407_v10, 1 }
 0x628   : > { %v1409_v24 = vadd.f32 %v1408_v57, %v1407_v10 }
 0x62a   : > { %1658 = vpush %v1409_v24 }
 0x65b   : > { %s1659_s11 = spop %1658 }
 0x65c   : > { %s1411_s0 = sadd.f32 %s1659_s11, %s3214_s10  ;;  %s2194_s10 = smov [#allocation8]  }
 0x65e   : > { %s1419_s21 = smul.f32 7.8125e-06, %s1411_s0 }
 0x660   : > { %s1420_s20 = sadd.f32 %s1419_s21, %s1418_s23 }
 0x662   : > { %s1421_s8 = smul.f32 %s1420_s20, %s3262_s22  ;;  %s2014_s22 = sshll.u32 %s2194_s10, 4  ;;  %s2015_s22 = int_to_ptr.vmem [resolvable:$false] %s2014_s22 }
 0x663   : > { %s2016_s7 = scalar_lea.vmem %s2015_s22, 32  ;;  %p2017_p12 = scmp.lt.s32.totalorder %s3108_s5, %s2015_s22 }
 0x664   : > { %v1422_v19 = vstv %s1421_s8  ;;  %p2018_p10 = scmp.lt.s32.totalorder %s2016_s7, %s2010_s9 }
 0x665   : > { %1423 = vst [vmem:[%s3243_s16] sm:$0x1] %v1422_v19 }
 0x666   : > { %p2019_p11 = por %p2018_p10, %p2017_p12 }
 0x668   : > { %p2020_p1 = pnand %p2019_p11, %p2013_p9 }
 0x66a   : > { %2023 = shalt.err (!%p2020_p1)
}
 0x66b   : > { %s2024_s29 = scalar_lea.hbm %s3106_s1, 16  ;;  %s2028_s23 = scalar_lea.hbm %s3165_s3, 96 }
 0x66c   : > { %p2025_p3 = scmp.ne.s32.totalorder %s3106_s1, %s2024_s29  ;;  %p2029_p0 = scmp.lt.u32.totalorder %s3106_s1, %s3165_s3 }
 0x66d   : > { %p2030_p2 = scmp.lt.u32.totalorder %s2028_s23, %s2024_s29  ;;  %p2032_p13 = scmp.lt.u32.totalorder %s2024_s29, %s3106_s1 }
 0x66e   : > { %p2026_p5 = pnand %p2025_p3, %p3244_p6 }
 0x66f   : > { %p2031_p4 = por %p2030_p2, %p2029_p0 }
 0x670   : > { %p2027_p8 = pneg %p2026_p5 }
 0x671   : > { %p2033_p7 = por %p2032_p13, %p2031_p4 }
 0x673   : > { %p2034_p9 = pnand %p2033_p7, %p2027_p8 }
 0x675   : > { %2037 = shalt.err (!%p2034_p9)
}
 0x676   : > { %1665 = dma.vmem_to_hbm [thread:$0]  (%p3244_p6), %s3108_s5, 16, %s3106_s1, %s1425_s15  }
 0x677 PF: > { %p1679_p12 = scmp.ge.s32.totalorder %s2120_s19, 2  ;;  %s1451_s30 = sand.u32 1, %s2092_s12  }
 0x678   : > { %p3245_p10 = scmp.ne.s32.totalorder %s3189_s4, 0  ;;  %s1452_s20 = scalar_lea.sflag [#allocation5], %s1451_s30 }
 0x67a   : > { %p1675_p11 = pnand %p1679_p12, %p3245_p10 }
 0x67c   : > { %2087 = dma.done.wait (!%p1675_p11), %s1452_s20, 16  }
 0x67d   : > { %2089 = vsyncadd (!%p1675_p11), %s1452_s20, 4294967280  ;;  %s22_s19 = sadd.s32 1, %s2120_s19   ;;  %s3246_s1 = sld [smem:[#allocation12_spill]] }
 0x67e   : > { %p19_p1 = scmp.ge.s32.totalorder %s22_s19, 8   ;;  %s3247_s28 = sld [smem:[#allocation13_spill]] }
 0x67f   : > { %s3248_s12 = smov %s2096_s13  ;;  %s3249_s13 = smov %s2100_s14 }
 0x680   : > { %s3250_s14 = smov %s2295_s6  ;;  %s3251_s15 = smov %s2112_s17 }
 0x681   : > { %s3252_s16 = smov %s2116_s18  ;;  %21 = sbr.rel (!%p19_p1) target bundleno = 12 (0xc), region = 109 }
 0x683   : > { %s3253_s17 = smov %s3246_s1 }
 0x684   : > { %s3254_s18 = smov %s3247_s28 }
 0x688   :  { %1456 = vsyncpa [#allocation4], 1 }
 0x689   :  { %1458 = vsyncpa [#allocation4 + $0x1], 1 }
 0x68a   :  { %1459 = vsyncpa [#allocation7], 1 }
 0x68b   :  { %1461 = vsyncpa [#allocation7 + $0x1], 1 }
 0x68c   :  { %1462 = vsyncpa [#allocation5], 1 }
 0x68d   :  { %1464 = vsyncpa [#allocation5 + $0x1], 1 }

</bundles_post_ra>
